<compile_context>
chip_gen: v5e
topology: v5e:2x2
jax: 0.10.0
libtpu: 0.0.40
codegen_flags: <defaults>
</compile_context>

<pallas_src>
import math
from functools import partial

import jax
import jax.numpy as jnp
import numpy as np
from jax.experimental import pallas as pl
from jax.experimental.pallas import tpu as pltpu


def _imha_kernel(x_ref, wqkv_ref, bqkv_ref, wo_ref, bo_ref, out_ref, attn_ref,
                 *, n_heads, d_head):
    Bt, S, D = x_ref.shape
    cdt = x_ref.dtype                        # MXU operand dtype (f32, or bf16 fast path)

    # ---- fused Q|K|V projection: one (Bt*S, D) @ (D, 3D) MXU matmul, f32 accumulation ----
    x2 = x_ref[...].reshape(Bt * S, D)
    qkv = jnp.dot(x2, wqkv_ref[...], preferred_element_type=jnp.float32)
    qkv = qkv + bqkv_ref[...]                # (Bt*S, 3D) f32

    # Cast Q / K / V once per block (not once per head).
    qf = qkv[:, 0 * D:1 * D].astype(cdt)
    kf = qkv[:, 1 * D:2 * D].astype(cdt)
    v3 = qkv[:, 2 * D:3 * D].astype(cdt).reshape(Bt, S, D)

    # 'hybrid' attention mode: mask only the diagonal.
    row = jax.lax.broadcasted_iota(jnp.int32, (S, S), 0)
    col = jax.lax.broadcasted_iota(jnp.int32, (S, S), 1)
    diag = (row == col)[None]                # (1, S, S)
    # NOTE: -inf on the diagonal matches the PyTorch module; an entirely masked row
    # (S == 1) would produce NaNs exactly as the module does.

    scale = 1.0 / math.sqrt(d_head)
    attn_sum = jnp.zeros((Bt, S, S), jnp.float32)
    for h in range(n_heads):                 # static unroll; single-batch-dim einsums only
        qh = qf[:, h * d_head:(h + 1) * d_head].reshape(Bt, S, d_head)
        kh = kf[:, h * d_head:(h + 1) * d_head].reshape(Bt, S, d_head)
        s = jnp.einsum("bqd,bkd->bqk", qh, kh,
                       preferred_element_type=jnp.float32) * scale
        s = jnp.where(diag, -jnp.inf, s)
        m = jnp.max(s, axis=-1, keepdims=True)
        e = jnp.exp(s - m)
        denom = jnp.sum(e, axis=-1, keepdims=True)
        # Exact reciprocal: softmax rows sum to 1 (interpretability output).
        # pl.reciprocal(..., approx=True) is the faster EUP-approximate alternative.
        attn_sum = attn_sum + e * pl.reciprocal(denom, approx=False)

    avg_attn = attn_sum * (1.0 / n_heads)    # (Bt, S, S) f32

    # TODO(synk): nn.Dropout(avg_attention) is identity at inference; training-mode
    #             dropout and the optional `mask` argument are not implemented.
    ctx = jnp.einsum("bqk,bkd->bqd", avg_attn.astype(cdt), v3,
                     preferred_element_type=jnp.float32)              # (Bt, S, D) f32
    out = jnp.dot(ctx.reshape(Bt * S, D).astype(cdt), wo_ref[...],
                  preferred_element_type=jnp.float32) + bo_ref[...]   # (Bt*S, D) f32

    out_ref[...] = out.reshape(Bt, S, D).astype(out_ref.dtype)
    attn_ref[...] = avg_attn.astype(attn_ref.dtype)


def _block_footprint_bytes(bb, S, D, csize):
    """Rough per-grid-step VMEM footprint for batch-block size bb."""
    rows = bb * S
    x_tile = 2 * rows * D * csize                            # double-buffered input block
    weights = 2 * (D * 3 * D * csize + 3 * D * 4 + D * D * csize + D * 4)
    qkv = rows * 3 * D * 4                                   # f32 projection result
    qkv_cast = 3 * rows * D * csize                          # q/k/v operand copies
    scores = 3 * bb * S * S * 4                              # s / e / attn_sum live
    ctx = rows * D * 4
    outs = 2 * (rows * D * 4 + bb * S * S * 4)               # double-buffered output blocks
    return x_tile + weights + qkv + qkv_cast + scores + ctx + outs


def _pick_block_b(B, S, D, csize, *, min_grid_steps=1, budget_bytes=40 * 1024 * 1024):
    """Largest divisor of B whose per-step footprint fits the VMEM budget (fills the MXU
    M dimension and amortizes the ~0.35us per-step overhead).  min_grid_steps=1 for
    single-TensorCore parts (v5e/v6e); pass 2 when targeting v7x so the 'parallel'
    batch axis can be sharded across its two TensorCores."""
    divs = [d for d in range(1, B + 1) if B % d == 0]
    cands = [d for d in divs if B // d >= min_grid_steps] or divs
    fitting = [d for d in cands if _block_footprint_bytes(d, S, D, csize) <= budget_bytes]
    return max(fitting) if fitting else min(cands)


def interpretable_mha(x, params, n_heads, *, block_b=None, use_bf16=True,
                      min_grid_steps=1, attn_dtype=jnp.float32):
    """x: (B, S, D) float32.
    params: (wqkv (D, 3D), bqkv (1, 3D), wo (D, D), bo (1, D)) in (in, out) layout,
    with Wq|Wk|Wv fused along the output dim.
    use_bf16: bf16 MXU operands, f32 accumulation and f32 softmax (recommended default).
    attn_dtype: dtype of the returned attention map (bf16 halves the quadratic writeback).
    Returns (output (B, S, D) f32, avg_attn (B, S, S))."""
    B, S, D = x.shape
    assert D % n_heads == 0
    d_head = D // n_heads
    wqkv, bqkv, wo, bo = params

    cdt = jnp.bfloat16 if use_bf16 else x.dtype
    csize = jnp.dtype(cdt).itemsize
    if block_b is None:
        block_b = _pick_block_b(B, S, D, csize, min_grid_steps=min_grid_steps)
    assert B % block_b == 0, "block_b must divide the batch size"
    nb = B // block_b

    # bf16 operands are cast once here, so the HBM-resident weight copies are half-size.
    x_c = x.astype(cdt)
    wqkv_c = wqkv.astype(cdt)
    wo_c = wo.astype(cdt)                    # biases stay f32 (added to the f32 accum)

    kernel = partial(_imha_kernel, n_heads=n_heads, d_head=d_head)

    fp = _block_footprint_bytes(block_b, S, D, csize)
    vmem_limit = int(min(48 * 1024 * 1024, max(32 * 1024 * 1024, 2 * fp)))

    # TODO(synk): at production D, single-buffer the constant-index weight blocks
    #             (pipeline_mode=pl.Buffered(1)) to halve resident weight VMEM; at
    #             production S, present lane-dense (padded / merged last-dim) output
    #             slabs for `out` / `avg_attn` to avoid masked partial stores.
    grid_spec = pltpu.PrefetchScalarGridSpec(
        num_scalar_prefetch=0,
        grid=(nb,),                          # blocked batch axis
        in_specs=[
            pl.BlockSpec((block_b, S, D), lambda b: (b, 0, 0)),   # x tile (Bt, S, D)
            pl.BlockSpec((D, 3 * D), lambda b: (0, 0)),           # fused Wq|Wk|Wv
            pl.BlockSpec((1, 3 * D), lambda b: (0, 0)),           # fused bq|bk|bv
            pl.BlockSpec((D, D), lambda b: (0, 0)),               # Wo
            pl.BlockSpec((1, D), lambda b: (0, 0)),               # bo
        ],
        out_specs=[
            pl.BlockSpec((block_b, S, D), lambda b: (b, 0, 0)),
            pl.BlockSpec((block_b, S, S), lambda b: (b, 0, 0)),
        ],
    )

    return pl.pallas_call(
        kernel,
        out_shape=(
            jax.ShapeDtypeStruct((B, S, D), jnp.float32),
            jax.ShapeDtypeStruct((B, S, S), attn_dtype),
        ),
        grid_spec=grid_spec,
        compiler_params=pltpu.CompilerParams(
            dimension_semantics=("parallel",),
            vmem_limit_bytes=vmem_limit,
        ),
    )(x_c, wqkv_c, bqkv, wo_c, bo)


def init_params(key, d_model, n_heads):
    """Deterministic kaiming_normal_ weights (std = sqrt(2/fan_in), fan_in = d_model),
    zero biases, matching the module's __init__.  Per-head Q/K weights are concatenated
    along the output dim, pre-transposed to (in, out), and Q|K|V fused into one matrix."""
    d_head = d_model // n_heads
    std = math.sqrt(2.0 / d_model)
    ks = jax.random.split(key, 2 * n_heads + 2)

    wq_heads = [jax.random.normal(ks[h], (d_head, d_model), jnp.float32) * std
                for h in range(n_heads)]
    wk_heads = [jax.random.normal(ks[n_heads + h], (d_head, d_model), jnp.float32) * std
                for h in range(n_heads)]
    wq = jnp.concatenate(wq_heads, axis=0).T        # (D, D), (in, out), head-major columns
    wk = jnp.concatenate(wk_heads, axis=0).T
    wv = (jax.random.normal(ks[2 * n_heads], (d_model, d_model), jnp.float32) * std).T
    wo = (jax.random.normal(ks[2 * n_heads + 1], (d_model, d_model), jnp.float32) * std).T

    wqkv = jnp.concatenate([wq, wk, wv], axis=1)    # (D, 3D) fused projection
    bqkv = jnp.zeros((1, 3 * d_model), jnp.float32)
    bo = jnp.zeros((1, d_model), jnp.float32)
    return (wqkv, bqkv, wo, bo)


def reference_numpy(x, params, n_heads):
    """Exact host-side float64 reference ('hybrid' mode, inference)."""
    wqkv, bqkv, wo, bo = params
    B, S, D = x.shape
    d_head = D // n_heads
    qkv = x @ wqkv + bqkv
    q, k, v = qkv[..., :D], qkv[..., D:2 * D], qkv[..., 2 * D:]
    diag = np.eye(S, dtype=bool)[None]
    attn_sum = np.zeros((B, S, S), np.float64)
    for h in range(n_heads):
        qh = q[..., h * d_head:(h + 1) * d_head]
        kh = k[..., h * d_head:(h + 1) * d_head]
        s = np.einsum("bqd,bkd->bqk", qh, kh) / math.sqrt(d_head)
        s = np.where(diag, -np.inf, s)
        e = np.exp(s - s.max(-1, keepdims=True))
        attn_sum = attn_sum + e / e.sum(-1, keepdims=True)
    avg = attn_sum / n_heads
    out = np.einsum("bqk,bkd->bqd", avg, v) @ wo + bo
    return out, avg


if __name__ == "__main__":
    B, S, D, H = 8, 8, 32, 4        # seq_len = 1 CLS token + 7 features
    key = jax.random.PRNGKey(0)
    kx, kp = jax.random.split(key)
    x = jax.random.normal(kx, (B, S, D), jnp.float32)
    params = init_params(kp, D, H)

    params64 = [np.asarray(p, np.float64) for p in params]
    out_gold, attn_gold = reference_numpy(np.asarray(x, np.float64), params64, H)

    # f32-operand MXU path; tolerance covers the MXU's reduced-precision f32 passes.
    out, attn = interpretable_mha(x, params, H, use_bf16=False)
    jax.block_until_ready((out, attn))
    assert out.shape == (B, S, D) and attn.shape == (B, S, S)
    np.testing.assert_allclose(np.asarray(out), out_gold, rtol=5e-2, atol=5e-2)
    np.testing.assert_allclose(np.asarray(attn), attn_gold, rtol=5e-2, atol=5e-2)
    np.testing.assert_allclose(np.asarray(attn).sum(-1), 1.0, rtol=0, atol=1e-3)

    # Default path: bf16 MXU operands, f32 accumulation + f32 softmax (v5e/v6e/v7x).
    out16, attn16 = interpretable_mha(x, params, H)
    jax.block_until_ready((out16, attn16))
    assert out16.shape == (B, S, D) and attn16.shape == (B, S, S)
    np.testing.assert_allclose(np.asarray(out16), out_gold, rtol=1.5e-1, atol=1.5e-1)
    np.testing.assert_allclose(np.asarray(attn16), attn_gold, rtol=1.5e-1, atol=1e-1)

    print("KERNEL_OK")
</pallas_src>

<mosaic_0001>
module attributes {stable_mosaic.version = 11 : i64} {
  func.func @_imha_kernel(%arg0: i32, %arg1: memref<8x8x32xf32, #tpu.memory_space<vmem>>, %arg2: memref<32x96xf32, #tpu.memory_space<vmem>>, %arg3: memref<1x96xf32, #tpu.memory_space<vmem>>, %arg4: memref<32x32xf32, #tpu.memory_space<vmem>>, %arg5: memref<1x32xf32, #tpu.memory_space<vmem>>, %arg6: memref<8x8x32xf32, #tpu.memory_space<vmem>>, %arg7: memref<8x8x8xf32, #tpu.memory_space<vmem>>) attributes {dimension_semantics = [#tpu.dimension_semantics<parallel>], iteration_bounds = array<i64: 1>, scalar_prefetch = 0 : i64, scratch_operands = 0 : i64, tpu.core_type = #tpu.core_type<tc>, window_params = [{transform_indices = @transform_0, window_bounds = array<i64: 8, 8, 32>}, {pipeline_mode = #tpu.pipeline_mode<synchronous>, transform_indices = @transform_1, window_bounds = array<i64: 32, 96>}, {pipeline_mode = #tpu.pipeline_mode<synchronous>, transform_indices = @transform_2, window_bounds = array<i64: 1, 96>}, {pipeline_mode = #tpu.pipeline_mode<synchronous>, transform_indices = @transform_3, window_bounds = array<i64: 32, 32>}, {pipeline_mode = #tpu.pipeline_mode<synchronous>, transform_indices = @transform_4, window_bounds = array<i64: 1, 32>}, {transform_indices = @transform_5, window_bounds = array<i64: 8, 8, 32>}, {transform_indices = @transform_6, window_bounds = array<i64: 8, 8, 8>}]} {
    %c0 = arith.constant 0 : index
    %c0_0 = arith.constant 0 : index
    %c0_1 = arith.constant 0 : index
    %0 = vector.load %arg1[%c0, %c0_0, %c0_1] : memref<8x8x32xf32, #tpu.memory_space<vmem>>, vector<8x8x32xf32>
    %1 = vector.shape_cast %0 : vector<8x8x32xf32> to vector<64x32xf32>
    %c0_2 = arith.constant 0 : index
    %c0_3 = arith.constant 0 : index
    %2 = vector.load %arg2[%c0_2, %c0_3] : memref<32x96xf32, #tpu.memory_space<vmem>>, vector<32x96xf32>
    %cst = arith.constant dense<0.000000e+00> : vector<64x96xf32>
    %3 = tpu.matmul %1, %2, %cst {dimension_numbers = #tpu.dot_dimension_numbers<[1], [0], [0], [1], [0, 0, 1, 1], [], []>} : vector<64x32xf32>, vector<32x96xf32>, vector<64x96xf32> -> vector<64x96xf32>
    %c0_4 = arith.constant 0 : index
    %c0_5 = arith.constant 0 : index
    %4 = vector.load %arg3[%c0_4, %c0_5] : memref<1x96xf32, #tpu.memory_space<vmem>>, vector<1x96xf32>
    %5 = vector.broadcast %4 : vector<1x96xf32> to vector<64x96xf32>
    %6 = arith.addf %3, %5 : vector<64x96xf32>
    %7 = vector.extract_strided_slice %6 {offsets = [0, 0], sizes = [64, 32], strides = [1, 1]} : vector<64x96xf32> to vector<64x32xf32>
    %8 = vector.extract_strided_slice %6 {offsets = [0, 32], sizes = [64, 32], strides = [1, 1]} : vector<64x96xf32> to vector<64x32xf32>
    %9 = vector.extract_strided_slice %6 {offsets = [0, 64], sizes = [64, 32], strides = [1, 1]} : vector<64x96xf32> to vector<64x32xf32>
    %10 = vector.shape_cast %9 : vector<64x32xf32> to vector<8x8x32xf32>
    %11 = tpu.iota {dimensions = array<i32: 0>} : vector<8x8xi32>
    %12 = tpu.iota {dimensions = array<i32: 1>} : vector<8x8xi32>
    %13 = arith.cmpi eq, %11, %12 : vector<8x8xi32>
    %14 = vector.shape_cast %13 : vector<8x8xi1> to vector<1x8x8xi1>
    %cst_6 = arith.constant 0.000000e+00 : f32
    %15 = vector.broadcast %cst_6 : f32 to vector<8x8x8xf32>
    %16 = vector.extract_strided_slice %7 {offsets = [0, 0], sizes = [64, 8], strides = [1, 1]} : vector<64x32xf32> to vector<64x8xf32>
    %17 = vector.shape_cast %16 : vector<64x8xf32> to vector<8x8x8xf32>
    %18 = vector.extract_strided_slice %8 {offsets = [0, 0], sizes = [64, 8], strides = [1, 1]} : vector<64x32xf32> to vector<64x8xf32>
    %19 = vector.shape_cast %18 : vector<64x8xf32> to vector<8x8x8xf32>
    "tpu.trace_start"() <{level = 10 : i32, message = "bqd,bkd->bqk"}> : () -> ()
    %cst_7 = arith.constant dense<0.000000e+00> : vector<8x8x8xf32>
    %20 = tpu.matmul %17, %19, %cst_7 {dimension_numbers = #tpu.dot_dimension_numbers<[2], [2], [1], [1], [0, 0, 0, 1, 1, 1], [0], [0]>} : vector<8x8x8xf32>, vector<8x8x8xf32>, vector<8x8x8xf32> -> vector<8x8x8xf32>
    "tpu.trace_stop"() : () -> ()
    %cst_8 = arith.constant 0.353553385 : f32
    %21 = vector.broadcast %cst_8 : f32 to vector<8x8x8xf32>
    %22 = arith.mulf %20, %21 : vector<8x8x8xf32>
    %cst_9 = arith.constant 0xFF800000 : f32
    %23 = vector.shape_cast %14 : vector<1x8x8xi1> to vector<1x8x8xi1>
    %24 = vector.broadcast %23 : vector<1x8x8xi1> to vector<8x8x8xi1>
    %25 = vector.broadcast %cst_9 : f32 to vector<8x8x8xf32>
    %26 = arith.select %24, %25, %22 : vector<8x8x8xi1>, vector<8x8x8xf32>
    %cst_10 = arith.constant dense<0xFF800000> : vector<8x8xf32>
    %27 = vector.multi_reduction <maximumf>, %26, %cst_10 [2] : vector<8x8x8xf32> to vector<8x8xf32>
    %28 = vector.shape_cast %27 : vector<8x8xf32> to vector<8x8x1xf32>
    %29 = vector.broadcast %28 : vector<8x8x1xf32> to vector<8x8x8xf32>
    %30 = arith.subf %26, %29 : vector<8x8x8xf32>
    %31 = math.exp %30 : vector<8x8x8xf32>
    %cst_11 = arith.constant dense<0.000000e+00> : vector<8x8xf32>
    %32 = vector.multi_reduction <add>, %31, %cst_11 [2] : vector<8x8x8xf32> to vector<8x8xf32>
    %33 = vector.shape_cast %32 : vector<8x8xf32> to vector<8x8x1xf32>
    %34 = tpu.reciprocal %33 : vector<8x8x1xf32> -> vector<8x8x1xf32>
    %35 = vector.broadcast %34 : vector<8x8x1xf32> to vector<8x8x8xf32>
    %36 = arith.mulf %31, %35 : vector<8x8x8xf32>
    %37 = arith.addf %15, %36 : vector<8x8x8xf32>
    %38 = vector.extract_strided_slice %7 {offsets = [0, 8], sizes = [64, 8], strides = [1, 1]} : vector<64x32xf32> to vector<64x8xf32>
    %39 = vector.shape_cast %38 : vector<64x8xf32> to vector<8x8x8xf32>
    %40 = vector.extract_strided_slice %8 {offsets = [0, 8], sizes = [64, 8], strides = [1, 1]} : vector<64x32xf32> to vector<64x8xf32>
    %41 = vector.shape_cast %40 : vector<64x8xf32> to vector<8x8x8xf32>
    "tpu.trace_start"() <{level = 10 : i32, message = "bqd,bkd->bqk"}> : () -> ()
    %cst_12 = arith.constant dense<0.000000e+00> : vector<8x8x8xf32>
    %42 = tpu.matmul %39, %41, %cst_12 {dimension_numbers = #tpu.dot_dimension_numbers<[2], [2], [1], [1], [0, 0, 0, 1, 1, 1], [0], [0]>} : vector<8x8x8xf32>, vector<8x8x8xf32>, vector<8x8x8xf32> -> vector<8x8x8xf32>
    "tpu.trace_stop"() : () -> ()
    %cst_13 = arith.constant 0.353553385 : f32
    %43 = vector.broadcast %cst_13 : f32 to vector<8x8x8xf32>
    %44 = arith.mulf %42, %43 : vector<8x8x8xf32>
    %cst_14 = arith.constant 0xFF800000 : f32
    %45 = vector.shape_cast %14 : vector<1x8x8xi1> to vector<1x8x8xi1>
    %46 = vector.broadcast %45 : vector<1x8x8xi1> to vector<8x8x8xi1>
    %47 = vector.broadcast %cst_14 : f32 to vector<8x8x8xf32>
    %48 = arith.select %46, %47, %44 : vector<8x8x8xi1>, vector<8x8x8xf32>
    %cst_15 = arith.constant dense<0xFF800000> : vector<8x8xf32>
    %49 = vector.multi_reduction <maximumf>, %48, %cst_15 [2] : vector<8x8x8xf32> to vector<8x8xf32>
    %50 = vector.shape_cast %49 : vector<8x8xf32> to vector<8x8x1xf32>
    %51 = vector.broadcast %50 : vector<8x8x1xf32> to vector<8x8x8xf32>
    %52 = arith.subf %48, %51 : vector<8x8x8xf32>
    %53 = math.exp %52 : vector<8x8x8xf32>
    %cst_16 = arith.constant dense<0.000000e+00> : vector<8x8xf32>
    %54 = vector.multi_reduction <add>, %53, %cst_16 [2] : vector<8x8x8xf32> to vector<8x8xf32>
    %55 = vector.shape_cast %54 : vector<8x8xf32> to vector<8x8x1xf32>
    %56 = tpu.reciprocal %55 : vector<8x8x1xf32> -> vector<8x8x1xf32>
    %57 = vector.broadcast %56 : vector<8x8x1xf32> to vector<8x8x8xf32>
    %58 = arith.mulf %53, %57 : vector<8x8x8xf32>
    %59 = arith.addf %37, %58 : vector<8x8x8xf32>
    %60 = vector.extract_strided_slice %7 {offsets = [0, 16], sizes = [64, 8], strides = [1, 1]} : vector<64x32xf32> to vector<64x8xf32>
    %61 = vector.shape_cast %60 : vector<64x8xf32> to vector<8x8x8xf32>
    %62 = vector.extract_strided_slice %8 {offsets = [0, 16], sizes = [64, 8], strides = [1, 1]} : vector<64x32xf32> to vector<64x8xf32>
    %63 = vector.shape_cast %62 : vector<64x8xf32> to vector<8x8x8xf32>
    "tpu.trace_start"() <{level = 10 : i32, message = "bqd,bkd->bqk"}> : () -> ()
    %cst_17 = arith.constant dense<0.000000e+00> : vector<8x8x8xf32>
    %64 = tpu.matmul %61, %63, %cst_17 {dimension_numbers = #tpu.dot_dimension_numbers<[2], [2], [1], [1], [0, 0, 0, 1, 1, 1], [0], [0]>} : vector<8x8x8xf32>, vector<8x8x8xf32>, vector<8x8x8xf32> -> vector<8x8x8xf32>
    "tpu.trace_stop"() : () -> ()
    %cst_18 = arith.constant 0.353553385 : f32
    %65 = vector.broadcast %cst_18 : f32 to vector<8x8x8xf32>
    %66 = arith.mulf %64, %65 : vector<8x8x8xf32>
    %cst_19 = arith.constant 0xFF800000 : f32
    %67 = vector.shape_cast %14 : vector<1x8x8xi1> to vector<1x8x8xi1>
    %68 = vector.broadcast %67 : vector<1x8x8xi1> to vector<8x8x8xi1>
    %69 = vector.broadcast %cst_19 : f32 to vector<8x8x8xf32>
    %70 = arith.select %68, %69, %66 : vector<8x8x8xi1>, vector<8x8x8xf32>
    %cst_20 = arith.constant dense<0xFF800000> : vector<8x8xf32>
    %71 = vector.multi_reduction <maximumf>, %70, %cst_20 [2] : vector<8x8x8xf32> to vector<8x8xf32>
    %72 = vector.shape_cast %71 : vector<8x8xf32> to vector<8x8x1xf32>
    %73 = vector.broadcast %72 : vector<8x8x1xf32> to vector<8x8x8xf32>
    %74 = arith.subf %70, %73 : vector<8x8x8xf32>
    %75 = math.exp %74 : vector<8x8x8xf32>
    %cst_21 = arith.constant dense<0.000000e+00> : vector<8x8xf32>
    %76 = vector.multi_reduction <add>, %75, %cst_21 [2] : vector<8x8x8xf32> to vector<8x8xf32>
    %77 = vector.shape_cast %76 : vector<8x8xf32> to vector<8x8x1xf32>
    %78 = tpu.reciprocal %77 : vector<8x8x1xf32> -> vector<8x8x1xf32>
    %79 = vector.broadcast %78 : vector<8x8x1xf32> to vector<8x8x8xf32>
    %80 = arith.mulf %75, %79 : vector<8x8x8xf32>
    %81 = arith.addf %59, %80 : vector<8x8x8xf32>
    %82 = vector.extract_strided_slice %7 {offsets = [0, 24], sizes = [64, 8], strides = [1, 1]} : vector<64x32xf32> to vector<64x8xf32>
    %83 = vector.shape_cast %82 : vector<64x8xf32> to vector<8x8x8xf32>
    %84 = vector.extract_strided_slice %8 {offsets = [0, 24], sizes = [64, 8], strides = [1, 1]} : vector<64x32xf32> to vector<64x8xf32>
    %85 = vector.shape_cast %84 : vector<64x8xf32> to vector<8x8x8xf32>
    "tpu.trace_start"() <{level = 10 : i32, message = "bqd,bkd->bqk"}> : () -> ()
    %cst_22 = arith.constant dense<0.000000e+00> : vector<8x8x8xf32>
    %86 = tpu.matmul %83, %85, %cst_22 {dimension_numbers = #tpu.dot_dimension_numbers<[2], [2], [1], [1], [0, 0, 0, 1, 1, 1], [0], [0]>} : vector<8x8x8xf32>, vector<8x8x8xf32>, vector<8x8x8xf32> -> vector<8x8x8xf32>
    "tpu.trace_stop"() : () -> ()
    %cst_23 = arith.constant 0.353553385 : f32
    %87 = vector.broadcast %cst_23 : f32 to vector<8x8x8xf32>
    %88 = arith.mulf %86, %87 : vector<8x8x8xf32>
    %cst_24 = arith.constant 0xFF800000 : f32
    %89 = vector.shape_cast %14 : vector<1x8x8xi1> to vector<1x8x8xi1>
    %90 = vector.broadcast %89 : vector<1x8x8xi1> to vector<8x8x8xi1>
    %91 = vector.broadcast %cst_24 : f32 to vector<8x8x8xf32>
    %92 = arith.select %90, %91, %88 : vector<8x8x8xi1>, vector<8x8x8xf32>
    %cst_25 = arith.constant dense<0xFF800000> : vector<8x8xf32>
    %93 = vector.multi_reduction <maximumf>, %92, %cst_25 [2] : vector<8x8x8xf32> to vector<8x8xf32>
    %94 = vector.shape_cast %93 : vector<8x8xf32> to vector<8x8x1xf32>
    %95 = vector.broadcast %94 : vector<8x8x1xf32> to vector<8x8x8xf32>
    %96 = arith.subf %92, %95 : vector<8x8x8xf32>
    %97 = math.exp %96 : vector<8x8x8xf32>
    %cst_26 = arith.constant dense<0.000000e+00> : vector<8x8xf32>
    %98 = vector.multi_reduction <add>, %97, %cst_26 [2] : vector<8x8x8xf32> to vector<8x8xf32>
    %99 = vector.shape_cast %98 : vector<8x8xf32> to vector<8x8x1xf32>
    %100 = tpu.reciprocal %99 : vector<8x8x1xf32> -> vector<8x8x1xf32>
    %101 = vector.broadcast %100 : vector<8x8x1xf32> to vector<8x8x8xf32>
    %102 = arith.mulf %97, %101 : vector<8x8x8xf32>
    %103 = arith.addf %81, %102 : vector<8x8x8xf32>
    %cst_27 = arith.constant 2.500000e-01 : f32
    %104 = vector.broadcast %cst_27 : f32 to vector<8x8x8xf32>
    %105 = arith.mulf %103, %104 : vector<8x8x8xf32>
    "tpu.trace_start"() <{level = 10 : i32, message = "bqk,bkd->bqd"}> : () -> ()
    %cst_28 = arith.constant dense<0.000000e+00> : vector<8x8x32xf32>
    %106 = tpu.matmul %105, %10, %cst_28 {dimension_numbers = #tpu.dot_dimension_numbers<[2], [1], [1], [2], [0, 0, 0, 1, 1, 2], [0], [0]>} : vector<8x8x8xf32>, vector<8x8x32xf32>, vector<8x8x32xf32> -> vector<8x8x32xf32>
    "tpu.trace_stop"() : () -> ()
    %107 = vector.shape_cast %106 : vector<8x8x32xf32> to vector<64x32xf32>
    %c0_29 = arith.constant 0 : index
    %c0_30 = arith.constant 0 : index
    %108 = vector.load %arg4[%c0_29, %c0_30] : memref<32x32xf32, #tpu.memory_space<vmem>>, vector<32x32xf32>
    %cst_31 = arith.constant dense<0.000000e+00> : vector<64x32xf32>
    %109 = tpu.matmul %107, %108, %cst_31 {dimension_numbers = #tpu.dot_dimension_numbers<[1], [0], [0], [1], [0, 0, 1, 1], [], []>} : vector<64x32xf32>, vector<32x32xf32>, vector<64x32xf32> -> vector<64x32xf32>
    %c0_32 = arith.constant 0 : index
    %c0_33 = arith.constant 0 : index
    %110 = vector.load %arg5[%c0_32, %c0_33] : memref<1x32xf32, #tpu.memory_space<vmem>>, vector<1x32xf32>
    %111 = vector.broadcast %110 : vector<1x32xf32> to vector<64x32xf32>
    %112 = arith.addf %109, %111 : vector<64x32xf32>
    %113 = vector.shape_cast %112 : vector<64x32xf32> to vector<8x8x32xf32>
    %c0_34 = arith.constant 0 : index
    %c0_35 = arith.constant 0 : index
    %c0_36 = arith.constant 0 : index
    %114 = vector.load %arg6[%c0_34, %c0_35, %c0_36] : memref<8x8x32xf32, #tpu.memory_space<vmem>>, vector<8x8x32xf32>
    tpu.vector_store %arg6[%c0_34, %c0_35, %c0_36], %113 {strides = array<i32>} : memref<8x8x32xf32, #tpu.memory_space<vmem>>, vector<8x8x32xf32>,
    %c0_37 = arith.constant 0 : index
    %c0_38 = arith.constant 0 : index
    %c0_39 = arith.constant 0 : index
    %115 = vector.load %arg7[%c0_37, %c0_38, %c0_39] : memref<8x8x8xf32, #tpu.memory_space<vmem>>, vector<8x8x8xf32>
    tpu.vector_store %arg7[%c0_37, %c0_38, %c0_39], %105 {strides = array<i32>} : memref<8x8x8xf32, #tpu.memory_space<vmem>>, vector<8x8x8xf32>,
    return
  }
  func.func @transform_0(%arg0: i32) -> (i32, i32, i32) {
    %c0_i32 = arith.constant 0 : i32
    %c0_i32_0 = arith.constant 0 : i32
    %c0_i32_1 = arith.constant 0 : i32
    return %arg0, %c0_i32, %c0_i32_0 : i32, i32, i32
  }
  func.func @transform_1(%arg0: i32) -> (i32, i32) {
    %c0_i32 = arith.constant 0 : i32
    %c0_i32_0 = arith.constant 0 : i32
    %c0_i32_1 = arith.constant 0 : i32
    return %c0_i32, %c0_i32_0 : i32, i32
  }
  func.func @transform_2(%arg0: i32) -> (i32, i32) {
    %c0_i32 = arith.constant 0 : i32
    %c0_i32_0 = arith.constant 0 : i32
    %c0_i32_1 = arith.constant 0 : i32
    return %c0_i32, %c0_i32_0 : i32, i32
  }
  func.func @transform_3(%arg0: i32) -> (i32, i32) {
    %c0_i32 = arith.constant 0 : i32
    %c0_i32_0 = arith.constant 0 : i32
    %c0_i32_1 = arith.constant 0 : i32
    return %c0_i32, %c0_i32_0 : i32, i32
  }
  func.func @transform_4(%arg0: i32) -> (i32, i32) {
    %c0_i32 = arith.constant 0 : i32
    %c0_i32_0 = arith.constant 0 : i32
    %c0_i32_1 = arith.constant 0 : i32
    return %c0_i32, %c0_i32_0 : i32, i32
  }
  func.func @transform_5(%arg0: i32) -> (i32, i32, i32) {
    %c0_i32 = arith.constant 0 : i32
    %c0_i32_0 = arith.constant 0 : i32
    %c0_i32_1 = arith.constant 0 : i32
    return %arg0, %c0_i32, %c0_i32_0 : i32, i32, i32
  }
  func.func @transform_6(%arg0: i32) -> (i32, i32, i32) {
    %c0_i32 = arith.constant 0 : i32
    %c0_i32_0 = arith.constant 0 : i32
    %c0_i32_1 = arith.constant 0 : i32
    return %arg0, %c0_i32, %c0_i32_0 : i32, i32, i32
  }
}

</mosaic_0001>

<bundles_post_ra>
// kernel: tpu_custom_call.1
= control target key start
LH: loop header
LB: loop body
LE: loop exit
PB: predicated region body
PF: predicated region fallthrough
CT: control target
= control target key end

     0   :  { %12 = vsyncpa [#allocation3], 0  ;;  %s4232_s0 = inlined_call_operand.hbm [shape: f32[8,8,32], index: 0, kind: input, shape index: {}]   ;;  %s4233_s1 = inlined_call_operand.hbm [shape: f32[32,96], index: 1, kind: input, shape index: {}]   ;;  %s4234_s2 = inlined_call_operand.vmem [shape: f32[1,96], index: 2, kind: input, shape index: {}]   ;;  %s4235_s3 = inlined_call_operand.hbm [shape: f32[32,32], index: 3, kind: input, shape index: {}]   ;;  %s4236_s4 = inlined_call_operand.vmem [shape: f32[1,32], index: 4, kind: input, shape index: {}]   ;;  %s4237_s5 = inlined_call_operand.hbm [shape: f32[8,8,32], index: 5, kind: output, shape index: {0}]   ;;  %s4238_s6 = inlined_call_operand.hbm [shape: f32[8,8,8], index: 6, kind: output, shape index: {1}]  }
   0x1   :  { %13 = vsyncpa [#allocation6], 0 }
   0x2   :  { %14 = vsyncpa [#allocation4], 0 }
   0x3   :  { %15 = vsyncpa [#allocation10], 0  ;;  %s33_s23 = sshll.u32 %s4233_s1, 4  ;;  %s2640_s24 = smov [#allocation5]   ;;  %s34_s23 = int_to_ptr.hbm [resolvable:$true] %s33_s23 }
   0x4   :  { %s35_s25 = sshll.u32 %s2640_s24, 4  ;;  %s20_s28 = sshll.u32 %s4232_s0, 4  ;;  %s36_s25 = int_to_ptr.vmem [resolvable:$true] %s35_s25  ;;  %s21_s28 = int_to_ptr.hbm [resolvable:$true] %s20_s28 }
   0x5   :  { %s2641_s29 = smov 128   ;;  %s2642_s30 = smov 8  }
   0x6   :  { %41 = dma.hbm_to_vmem [thread:$0]  %s34_s23, 512, %s36_s25, [#allocation6], %s2641_s29, %s2641_s29, %s2642_s30  }
   0x7   :  { %s2643_s7 = smov [#allocation2]   ;;  %s48_s1 = sshll.u32 %s4235_s3, 4  ;;  %s49_s1 = int_to_ptr.hbm [resolvable:$true] %s48_s1 }
   0x8   :  { %s22_s8 = sshll.u32 %s2643_s7, 4  ;;  %s2644_s0 = smov [#allocation7]   ;;  %s23_s8 = int_to_ptr.vmem [resolvable:$true] %s22_s8 }
   0x9   :  { %28 = dma.hbm_to_vmem [thread:$0]  %s21_s28, 1024, %s23_s8, [#allocation3], %s2641_s29, %s2641_s29, %s2642_s30  }
   0xa   :  { %s50_s11 = sshll.u32 %s2644_s0, 4  ;;  %s51_s11 = int_to_ptr.vmem [resolvable:$true] %s50_s11 }
   0xb   :  { %56 = dma.hbm_to_vmem [thread:$0]  %s49_s1, 512, %s51_s11, [#allocation6], %s2641_s29, %s2641_s29, %s2642_s30  }
   0xc   :  { %2632 = dma.done.wait [#allocation3], 1024  }
   0xd   :  { %2633 = vsyncadd [#allocation3], 4294966272 }
   0xe   :  { %2634 = dma.done.wait [#allocation6], 1024  }
   0xf   :  { %2635 = vsyncadd [#allocation6], 4294966272  ;;  %v82_v0 = vld [vmem:[#allocation5 + $0x18] sm:$0xff]  ;;  %v81_v1 = vld [vmem:[#allocation5 + $0x10] sm:$0xff]  ;;  %vm87_vm0 = vcmask 261120   ;;  %s2645_s13 = smov 112  }
  0x10   :  { %124 = vmatpush.msra.mxu0 %v82_v0  ;;  %v80_v2 = vld [vmem:[#allocation5 + $0x8] sm:$0xff]  ;;  %v79_v3 = vld [vmem:[#allocation5] sm:$0xff]  ;;  %v73_v6 = vld [vmem:[#allocation2 + $0x10] sm:$0xff]  ;;  %s2646_s14 = smov 120   ;;  %s2647_s15 = smov 88   ;;  %vm161_vm1 = vcmask 64512  }
  0x11   :  { %v71_v4 = vld [vmem:[#allocation2] sm:$0xff]  ;;  %v72_v5 = vld [vmem:[#allocation2 + $0x8] sm:$0xff]  ;;  %v74_v7 = vld [vmem:[#allocation2 + $0x18] sm:$0xff]  ;;  %s2649_s16 = smov 80   ;;  %s2650_s17 = smov 104  }
  0x12   :  { %125 = vmatpush.msra.mxu0 %v81_v1  ;;  %v75_v8 = vld [vmem:[#allocation2 + $0x20] sm:$0xff]  ;;  %v76_v9 = vld [vmem:[#allocation2 + $0x28] sm:$0xff]  ;;  %v77_v10 = vld [vmem:[#allocation2 + $0x30] sm:$0xff]  ;;  %s2651_s18 = smov 72   ;;  %s2652_s19 = smov 64  }
  0x13   :  { %v78_v11 = vld [vmem:[#allocation2 + $0x38] sm:$0xff]  ;;  %v2382_v12 = vld [vmem:[%s4234_s2] ss:$0 sm:$0xff]  ;;  %s2648_s2 = smov 96   ;;  %s2653_s20 = smov [#allocation9]  }
  0x14   :  { %126 = vmatpush.msra.mxu0 %v80_v2  ;;  %s2235_s21 = sshll.u32 %s2653_s20, 4  ;;  %s2237_s24 = sshll.u32 %s4238_s6, 4  ;;  %s2236_s21 = int_to_ptr.vmem [resolvable:$true] %s2235_s21  ;;  %s2238_s24 = int_to_ptr.hbm [resolvable:$true] %s2237_s24 }
  0x15   :  { %s2224_s7 = sshll.u32 %s4237_s5, 4  ;;  %s2225_s7 = int_to_ptr.hbm [resolvable:$true] %s2224_s7 }
  0x16   :  { %127 = vmatpush.msra.mxu0 %v79_v3 }
  0x17   :  { %2256 = vmatmul.msk.f32.vlgmr.msra.gmra.mxu0 %vm87_vm0, %v71_v4 }
  0x1f   :  { %2257 = vmatmul.msk.f32.gmra.mxu0 %vm87_vm0, %v72_v5 }
  0x27   :  { %2258 = vmatmul.msk.f32.gmra.mxu0 %vm87_vm0, %v73_v6 }
  0x2f   :  { %2259 = vmatmul.msk.f32.gmra.mxu0 %vm87_vm0, %v74_v7 }
  0x37   :  { %2260 = vmatmul.msk.f32.gmra.mxu0 %vm87_vm0, %v75_v8 }
  0x3f   :  { %2261 = vmatmul.msk.f32.gmra.mxu0 %vm87_vm0, %v76_v9 }
  0x47   :  { %2262 = vmatmul.msk.f32.gmra.mxu0 %vm87_vm0, %v77_v10 }
  0x4f   :  { %2263 = vmatmul.msk.f32.gmra.mxu0 %vm87_vm0, %v78_v11 }
  0x94   :  { %v129_v13 = vpop.f32.mrf.mxu0 }
  0x95   :  { %v2719_v14 = vadd.f32 %v2382_v12, %v129_v13 }
  0x97   :  { %1033 = vrot.lane.b32.xlu0 %v2719_v14, %s2645_s13  ;;  %593 = vrot.lane.b32.xlu2 %v2719_v14, %s2646_s14 }
  0x98   :  { %595 = vrot.lane.b32.xlu1 %v2719_v14, %s2647_s15 }
  0x9c   :  { %v132_v15 = vpop.f32.mrf.mxu0 }
  0x9d   :  { %v2727_v16 = vadd.f32 %v2382_v12, %v132_v15 }
  0x9f   :  { %621 = vrot.lane.b32.xlu0 %v2727_v16, %s2646_s14  ;;  %159 = vrot.lane.b32.xlu2 %v2719_v14, %s2648_s2 }
  0xa0   :  { %1035 = vrot.lane.b32.xlu1 %v2719_v14, %s2649_s16 }
  0xa4   :  { %v135_v17 = vpop.f32.mrf.mxu0 }
  0xa5   :  { %v2735_v18 = vadd.f32 %v2382_v12, %v135_v17 }
  0xa7   :  { %214 = vrot.lane.b32.xlu0 %v2735_v18, %s2648_s2  ;;  %623 = vrot.lane.b32.xlu2 %v2727_v16, %s2647_s15  ;;  %v2367_v44 = vpack.i.bf16 %v2719_v14, %v2735_v18 }
  0xa8   :  { %1061 = vrot.lane.b32.xlu1 %v2727_v16, %s2645_s13 }
  0xac   :  { %v138_v19 = vpop.f32.mrf.mxu0 }
  0xad   :  { %v2749_v20 = vadd.f32 %v2382_v12, %v138_v19 }
  0xaf   :  { %649 = vrot.lane.b32.xlu0 %v2735_v18, %s2646_s14  ;;  %1063 = vrot.lane.b32.xlu2 %v2727_v16, %s2649_s16  ;;  %v2372_v48 = vpack.i.bf16 %v2727_v16, %v2749_v20 }
  0xb0   :  { %651 = vrot.lane.b32.xlu1 %v2735_v18, %s2647_s15 }
  0xb4   :  { %v141_v21 = vpop.f32.mrf.mxu0 }
  0xb5   :  { %v2757_v22 = vadd.f32 %v2382_v12, %v141_v21 }
  0xb7   :  { %1117 = vrot.lane.b32.xlu0 %v2749_v20, %s2645_s13  ;;  %241 = vrot.lane.b32.xlu2 %v2749_v20, %s2648_s2 }
  0xb8   :  { %679 = vrot.lane.b32.xlu1 %v2749_v20, %s2647_s15 }
  0xbc   :  { %v144_v23 = vpop.f32.mrf.mxu0 }
  0xbd   :  { %v2765_v24 = vadd.f32 %v2382_v12, %v144_v23 }
  0xbf   :  { %705 = vrot.lane.b32.xlu0 %v2757_v22, %s2646_s14  ;;  %677 = vrot.lane.b32.xlu2 %v2749_v20, %s2646_s14 }
  0xc0   :  { %1119 = vrot.lane.b32.xlu1 %v2749_v20, %s2649_s16 }
  0xc4   :  { %v147_v25 = vpop.f32.mrf.mxu0 }
  0xc5   :  { %v2779_v26 = vadd.f32 %v2382_v12, %v147_v25 }
  0xc7   :  { %295 = vrot.lane.b32.xlu0 %v2765_v24, %s2648_s2  ;;  %707 = vrot.lane.b32.xlu2 %v2757_v22, %s2647_s15 }
  0xc8   :  { %268 = vrot.lane.b32.xlu1 %v2757_v22, %s2648_s2 }
  0xcc   :  { %v150_v27 = vpop.f32.mrf.mxu0 }
  0xcd   :  { %v2787_v28 = vadd.f32 %v2382_v12, %v150_v27  ;;  %v153_v12 = vlaneseq }
  0xcf   :  { %733 = vrot.lane.b32.xlu0 %v2765_v24, %s2646_s14  ;;  %1147 = vrot.lane.b32.xlu2 %v2757_v22, %s2649_s16  ;;  %v154_v13 = vshrl.u32 %v153_v12, 7 }
  0xd0   :  { %1145 = vrot.lane.b32.xlu1 %v2757_v22, %s2645_s13 }
  0xd7   :  { %322 = vrot.lane.b32.xlu0 %v2779_v26, %s2648_s2  ;;  %763 = vrot.lane.b32.xlu2 %v2779_v26, %s2647_s15 }
  0xd8   :  { %735 = vrot.lane.b32.xlu1 %v2765_v24, %s2647_s15 }
  0xdf   :  { %349 = vrot.lane.b32.xlu0 %v2787_v28, %s2648_s2  ;;  %1203 = vrot.lane.b32.xlu2 %v2779_v26, %s2649_s16 }
  0xe0   :  { %761 = vrot.lane.b32.xlu1 %v2779_v26, %s2646_s14 }
  0xe7   :  { %1091 = vrot.lane.b32.xlu0 %v2735_v18, %s2649_s16  ;;  %1529 = vrot.lane.b32.xlu2 %v2735_v18, %s2650_s17 }
  0xe8   :  { %1089 = vrot.lane.b32.xlu1 %v2735_v18, %s2645_s13 }
  0xef   :  { %1531 = vrot.lane.b32.xlu0 %v2735_v18, %s2651_s18  ;;  %1173 = vrot.lane.b32.xlu2 %v2765_v24, %s2645_s13 }
  0xf0   :  { %1201 = vrot.lane.b32.xlu1 %v2779_v26, %s2645_s13 }
  0xf1   :  { %v2807_v29 = vpop.permute.xlu2 %593 }
  0xf7   :  { %187 = vrot.lane.b32.xlu0 %v2727_v16, %s2648_s2  ;;  %791 = vrot.lane.b32.xlu2 %v2787_v28, %s2647_s15 }
  0xf8   :  { %1175 = vrot.lane.b32.xlu1 %v2765_v24, %s2649_s16 }
  0xf9   :  { %v160_v30 = vpop.permute.xlu2 %159 }
  0xfa   :  { %2264 = vmatpush.xpose.msk.msrb.mxu0 %vm161_vm1, %v160_v30 }
  0xfd   :  { %2265 = vmatmul.msk.f32.vlgmr.msrb.gmra.mxu0 %vm161_vm1, %v2719_v14 }
  0xff   :  { %789 = vrot.lane.b32.xlu0 %v2787_v28, %s2646_s14  ;;  %1231 = vrot.lane.b32.xlu2 %v2787_v28, %s2649_s16 }
 0x100   :  { %1229 = vrot.lane.b32.xlu1 %v2787_v28, %s2645_s13 }
 0x101   :  { %v624_v31 = vpop.permute.xlu2 %623 }
 0x107   :  { %1503 = vrot.lane.b32.xlu0 %v2727_v16, %s2651_s18  ;;  %1501 = vrot.lane.b32.xlu2 %v2727_v16, %s2650_s17 }
 0x108   :  { %1643 = vrot.lane.b32.xlu1 %v2779_v26, %s2651_s18 }
 0x109   :  { %v2830_v32 = vpop.permute.xlu0 %1033  ;;  %v1064_v33 = vpop.permute.xlu2 %1063 }
 0x10a   :  { %v596_v34 = vpop.permute.xlu1 %595 }
 0x10f   :  { %1641 = vrot.lane.b32.xlu0 %v2779_v26, %s2650_s17  ;;  %1559 = vrot.lane.b32.xlu2 %v2749_v20, %s2651_s18 }
 0x110   :  { %1475 = vrot.lane.b32.xlu1 %v2719_v14, %s2651_s18 }
 0x111   :  { %v622_v35 = vpop.permute.xlu0 %621  ;;  %v242_v36 = vpop.permute.xlu2 %241 }
 0x112   :  { %v2838_v37 = vpop.permute.xlu1 %1035  ;;  %2270 = vmatpush.xpose.msk.msra.mxu1 %vm161_vm1, %v242_v36 }
 0x115   :  { %2271 = vmatmul.msk.f32.vlgmr.msra.gmra.mxu1 %vm161_vm1, %v2749_v20 }
 0x117   :  { %1473 = vrot.lane.b32.xlu0 %v2719_v14, %s2650_s17  ;;  %1615 = vrot.lane.b32.xlu2 %v2765_v24, %s2651_s18  ;;  %v156_v14 = vand.u32 127, %v153_v12 }
 0x118   :  { %1557 = vrot.lane.b32.xlu1 %v2749_v20, %s2650_s17 }
 0x119   :  { %v215_v38 = vpop.permute.xlu0 %214  ;;  %v678_v39 = vpop.permute.xlu2 %677  ;;  %vm2926_vm2 = vcmp.eq.s32.totalorder %v154_v13, %v156_v14 }
 0x11a   :  { %v1062_v40 = vpop.permute.xlu1 %1061  ;;  %2268 = vmatpush.xpose.msk.msra.mxu3 %vm161_vm1, %v215_v38 }
 0x11d   :  { %2269 = vmatmul.msk.f32.vlgmr.msra.gmra.mxu3 %vm161_vm1, %v2735_v18 }
 0x11f   :  { %1613 = vrot.lane.b32.xlu0 %v2765_v24, %s2650_s17  ;;  %1585 = vrot.lane.b32.xlu2 %v2757_v22, %s2650_s17 }
 0x120   :  { %1587 = vrot.lane.b32.xlu1 %v2757_v22, %s2651_s18 }
 0x121   :  { %v650_v41 = vpop.permute.xlu0 %649  ;;  %v708_v42 = vpop.permute.xlu2 %707 }
 0x122   :  { %v652_v43 = vpop.permute.xlu1 %651 }
 0x127   :  { %1671 = vrot.lane.b32.xlu0 %v2787_v28, %s2651_s18  ;;  %2368 = vrot.lane.b32.xlu2 %v2367_v44, %s2652_s19 }
 0x128   :  { %1669 = vrot.lane.b32.xlu1 %v2787_v28, %s2650_s17 }
 0x129   :  { %v2865_v45 = vpop.permute.xlu0 %1117  ;;  %v1148_v46 = vpop.permute.xlu2 %1147 }
 0x12a   :  { %v680_v47 = vpop.permute.xlu1 %679 }
 0x12f   :  { %2373 = vrot.lane.b32.xlu0 %v2372_v48, %s2652_s19 }
 0x131   :  { %v706_v49 = vpop.permute.xlu0 %705  ;;  %v764_v50 = vpop.permute.xlu2 %763 }
 0x132   :  { %v1120_v51 = vpop.permute.xlu1 %1119 }
 0x139   :  { %v296_v52 = vpop.permute.xlu0 %295  ;;  %v1204_v53 = vpop.permute.xlu2 %1203 }
 0x13a   :  { %v269_v54 = vpop.permute.xlu1 %268  ;;  %2274 = vmatpush.xpose.msk.msrb.mxu3 %vm161_vm1, %v296_v52 }
 0x13b   :  { %2272 = vmatpush.xpose.msk.msra.mxu2 %vm161_vm1, %v269_v54 }
 0x13d   :  { %2275 = vmatmul.msk.f32.vlgmr.msrb.gmra.mxu3 %vm161_vm1, %v2765_v24 }
 0x13e   :  { %2280 = vmatpush.xpose.msk.msra.mxu3 %vm161_vm1, %v596_v34  ;;  %2273 = vmatmul.msk.f32.vlgmr.msra.gmra.mxu2 %vm161_vm1, %v2757_v22 }
 0x141   :  { %v734_v55 = vpop.permute.xlu0 %733  ;;  %v2878_v56 = vpop.permute.xlu2 %1529 }
 0x142   :  { %2286 = vmatpush.xpose.msk.msrb.mxu3 %vm161_vm1, %v680_v47  ;;  %v1146_v57 = vpop.permute.xlu1 %1145 }
 0x145   :  { %2281 = vmatmul.msk.f32.vlgmr.msra.gmra.mxu3 %vm161_vm1, %v2807_v29 }
 0x146   :  { %2292 = vmatpush.xpose.msk.msra.mxu3 %vm161_vm1, %v764_v50 }
 0x149   :  { %v323_v58 = vpop.permute.xlu0 %322  ;;  %v2883_v59 = vpop.permute.xlu2 %1173 }
 0x14a   :  { %v736_v60 = vpop.permute.xlu1 %735  ;;  %2276 = vmatpush.xpose.msk.msrb.mxu1 %vm161_vm1, %v323_v58 }
 0x14d   :  { %2277 = vmatmul.msk.f32.vlgmr.msrb.gmra.mxu1 %vm161_vm1, %v2779_v26  ;;  %2287 = vmatmul.msk.f32.vlgmr.msrb.gmra.mxu3 %vm161_vm1, %v678_v39 }
 0x14e   :  { %2282 = vmatpush.xpose.msk.msra.mxu1 %vm161_vm1, %v624_v31  ;;  %2298 = vmatpush.xpose.msk.msrb.mxu3 %vm161_vm1, %v1064_v33 }
 0x151   :  { %v350_v61 = vpop.permute.xlu0 %349  ;;  %v792_v62 = vpop.permute.xlu2 %791 }
 0x152   :  { %2288 = vmatpush.xpose.msk.msrb.mxu1 %vm161_vm1, %v708_v42  ;;  %v762_v63 = vpop.permute.xlu1 %761  ;;  %2278 = vmatpush.xpose.msk.msrb.mxu2 %vm161_vm1, %v350_v61 }
 0x155   :  { %2279 = vmatmul.msk.f32.vlgmr.msrb.gmra.mxu2 %vm161_vm1, %v2787_v28  ;;  %2283 = vmatmul.msk.f32.vlgmr.msra.gmra.mxu1 %vm161_vm1, %v622_v35 }
 0x156   :  { %2284 = vmatpush.xpose.msk.msra.mxu2 %vm161_vm1, %v652_v43  ;;  %2293 = vmatmul.msk.f32.vlgmr.msra.gmra.mxu3 %vm161_vm1, %v762_v63 }
 0x157   :  { %2294 = vmatpush.xpose.msk.msra.mxu1 %vm161_vm1, %v792_v62  ;;  %2304 = vmatpush.xpose.msk.msra.mxu3 %vm161_vm1, %v1148_v46 }
 0x159   :  { %v1092_v0 = vpop.permute.xlu0 %1091  ;;  %v1232_v1 = vpop.permute.xlu2 %1231 }
 0x15a   :  { %2290 = vmatpush.xpose.msk.msrb.mxu2 %vm161_vm1, %v736_v60  ;;  %v1090_v2 = vpop.permute.xlu1 %1089 }
 0x15d   :  { %2285 = vmatmul.msk.f32.vlgmr.msra.gmra.mxu2 %vm161_vm1, %v650_v41  ;;  %2289 = vmatmul.msk.f32.vlgmr.msrb.gmra.mxu1 %vm161_vm1, %v706_v49 }
 0x15e   :  { %2296 = vmatpush.xpose.msk.msra.mxu2 %vm161_vm1, %v2838_v37  ;;  %2299 = vmatmul.msk.f32.vlgmr.msrb.gmra.mxu3 %vm161_vm1, %v1062_v40 }
 0x15f   :  { %2300 = vmatpush.xpose.msk.msrb.mxu1 %vm161_vm1, %v1092_v0  ;;  %2310 = vmatpush.xpose.msk.msrb.mxu3 %vm161_vm1, %v1232_v1 }
 0x161   :  { %v1532_v3 = vpop.permute.xlu0 %1531  ;;  %v1502_v4 = vpop.permute.xlu2 %1501 }
 0x162   :  { %v1202_v5 = vpop.permute.xlu1 %1201 }
 0x165   :  { %2291 = vmatmul.msk.f32.vlgmr.msrb.gmra.mxu2 %vm161_vm1, %v734_v55 }
 0x166   :  { %2302 = vmatpush.xpose.msk.msrb.mxu2 %vm161_vm1, %v1120_v51  ;;  %2305 = vmatmul.msk.f32.vlgmr.msra.gmra.mxu3 %vm161_vm1, %v1146_v57 }
 0x167   :  { %2316 = vmatpush.xpose.msk.msra.mxu3 %vm161_vm1, %v1532_v3 }
 0x169   :  { %v188_v6 = vpop.permute.xlu0 %187  ;;  %v1560_v7 = vpop.permute.xlu2 %1559 }
 0x16a   :  { %v1176_v8 = vpop.permute.xlu1 %1175  ;;  %2266 = vmatpush.xpose.msk.msra.mxu0 %vm161_vm1, %v188_v6 }
 0x16d   :  { %2267 = vmatmul.msk.f32.vlgmr.msra.gmra.mxu0 %vm161_vm1, %v2727_v16  ;;  %2297 = vmatmul.msk.f32.vlgmr.msra.gmra.mxu2 %vm161_vm1, %v2830_v32 }
 0x16e   :  { %2318 = vmatpush.xpose.msk.msrb.mxu0 %vm161_vm1, %v1560_v7  ;;  %2308 = vmatpush.xpose.msk.msra.mxu2 %vm161_vm1, %v1204_v53 }
 0x171   :  { %v790_v9 = vpop.permute.xlu0 %789  ;;  %v1616_v10 = vpop.permute.xlu2 %1615 }
 0x172   :  { %v1230_v11 = vpop.permute.xlu1 %1229  ;;  %2295 = vmatmul.msk.f32.vlgmr.msra.gmra.mxu1 %vm161_vm1, %v790_v9 }
 0x173   :  { %2306 = vmatpush.xpose.msk.msra.mxu1 %vm161_vm1, %v1176_v8  ;;  %2311 = vmatmul.msk.f32.vlgmr.msrb.gmra.mxu3 %vm161_vm1, %v1230_v11 }
 0x175   :  { %2303 = vmatmul.msk.f32.vlgmr.msrb.gmra.mxu2 %vm161_vm1, %v2865_v45 }
 0x179   :  { %v1504_v15 = vpop.permute.xlu0 %1503  ;;  %v1586_v16 = vpop.permute.xlu2 %1585 }
 0x17a   :  { %v1644_v17 = vpop.permute.xlu1 %1643  ;;  %v183_v18 = vpop.f32.mrf.mxu0  ;;  %2301 = vmatmul.msk.f32.vlgmr.msrb.gmra.mxu1 %vm161_vm1, %v1090_v2  ;;  %2314 = vmatpush.xpose.msk.msrb.mxu2 %vm161_vm1, %v1504_v15 }
 0x17b   :  { %v375_v20 = vmul.f32 0.35355338, %v183_v18  ;;  %2317 = vmatmul.msk.f32.vlgmr.msra.gmra.mxu3 %vm161_vm1, %v2878_v56 }
 0x17c   :  { %2324 = vmatpush.xpose.msk.msrb.mxu3 %vm161_vm1, %v1644_v17 }
 0x17d   :  { %2309 = vmatmul.msk.f32.vlgmr.msra.gmra.mxu2 %vm161_vm1, %v1202_v5  ;;  %v2936_v21 = vsel %vm2926_vm2, -inf, %v375_v20 }
 0x17e   :  { %2322 = vmatpush.xpose.msk.msra.mxu2 %vm161_vm1, %v1616_v10  ;;  %v393_v23 = vsel %vm161_vm1, %v2936_v21, -inf }
 0x17f   :  { %394 = vmax.xlane.f32.xlu2 %v393_v23 }
 0x181   :  { %v1642_v25 = vpop.permute.xlu0 %1641  ;;  %v2369_v27 = vpop.permute.xlu2 %2368 }
 0x182   :  { %v2370_v29 = vunpack.i.l.bf16 %v2369_v27  ;;  %v1476_v30 = vpop.permute.xlu1 %1475  ;;  %2307 = vmatmul.msk.f32.vlgmr.msra.gmra.mxu1 %vm161_vm1, %v2883_v59  ;;  %v2371_v34 = vunpack.i.h.bf16 %v2369_v27 }
 0x183   :  { %2312 = vmatpush.xpose.msk.msrb.mxu1 %vm161_vm1, %v1476_v30  ;;  %2325 = vmatmul.msk.f32.vlgmr.msrb.gmra.mxu3 %vm161_vm1, %v1642_v25 }
 0x184   :  { %1994 = vmatpush.msra.mxu3 %v2370_v29 }
 0x185   :  { %2315 = vmatmul.msk.f32.vlgmr.msrb.gmra.mxu2 %vm161_vm1, %v1502_v4 }
 0x189   :  { %v1474_v31 = vpop.permute.xlu0 %1473 }
 0x18a   :  { %v1558_v32 = vpop.permute.xlu1 %1557  ;;  %2313 = vmatmul.msk.f32.vlgmr.msrb.gmra.mxu1 %vm161_vm1, %v1474_v31 }
 0x18b   :  { %2319 = vmatmul.msk.f32.vlgmr.msrb.gmra.mxu0 %vm161_vm1, %v1558_v32 }
 0x191   :  { %v1614_v33 = vpop.permute.xlu0 %1613 }
 0x192   :  { %v1588_v35 = vpop.permute.xlu1 %1587  ;;  %2323 = vmatmul.msk.f32.vlgmr.msra.gmra.mxu2 %vm161_vm1, %v1614_v33  ;;  %v264_v47 = vpop.f32.mrf.mxu1 }
 0x193   :  { %2320 = vmatpush.xpose.msk.msra.mxu1 %vm161_vm1, %v1588_v35  ;;  %v378_v11 = vmul.f32 0.35355338, %v264_v47 }
 0x195   :  { %v3003_v14 = vsel %vm2926_vm2, -inf, %v378_v11 }
 0x196   :  { %2321 = vmatmul.msk.f32.vlgmr.msra.gmra.mxu1 %vm161_vm1, %v1586_v16  ;;  %v402_v15 = vsel %vm161_vm1, %v3003_v14, -inf }
 0x197   :  { %1942 = vmatpush.msrb.mxu1 %v2371_v34 }
 0x199   :  { %v1672_v36 = vpop.permute.xlu0 %1671 }
 0x19a   :  { %2326 = vmatpush.xpose.msk.msra.mxu0 %vm161_vm1, %v1672_v36  ;;  %v1670_v37 = vpop.permute.xlu1 %1669 }
 0x19d   :  { %2327 = vmatmul.msk.f32.vlgmr.msra.gmra.mxu0 %vm161_vm1, %v1670_v37 }
 0x1a0   :  { %v237_v38 = vpop.f32.mrf.mxu3 }
 0x1a1   :  { %v377_v39 = vmul.f32 0.35355338, %v237_v38  ;;  %v2374_v40 = vpop.permute.xlu0 %2373 }
 0x1a2   :  { %v2376_v41 = vunpack.i.h.bf16 %v2374_v40  ;;  %v2375_v42 = vunpack.i.l.bf16 %v2374_v40 }
 0x1a3   :  { %v2955_v43 = vsel %vm2926_vm2, -inf, %v377_v39 }
 0x1a4   :  { %1968 = vmatpush.msrb.mxu2 %v2376_v41  ;;  %2020 = vmatpush.msrb.mxu0 %v2375_v42  ;;  %v399_v44 = vsel %vm161_vm1, %v2955_v43, -inf }
 0x1a5   :  { %400 = vmax.xlane.f32.xlu2 %v399_v44 }
 0x1c0   :  { %v318_v45 = vpop.f32.mrf.mxu3 }
 0x1c1   :  { %v380_v46 = vmul.f32 0.35355338, %v318_v45  ;;  %v291_v57 = vpop.f32.mrf.mxu2 }
 0x1c2   :  { %v379_v42 = vmul.f32 0.35355338, %v291_v57 }
 0x1c3   :  { %v2961_v48 = vsel %vm2926_vm2, -inf, %v380_v46 }
 0x1c4   :  { %v408_v49 = vsel %vm161_vm1, %v2961_v48, -inf  ;;  %v3041_v46 = vsel %vm2926_vm2, -inf, %v379_v42 }
 0x1c5   :  { %409 = vmax.xlane.f32.xlu2 %v408_v49 }
 0x1c8   :  { %v618_v52 = vpop.f32.mrf.mxu3 }
 0x1c9   :  { %v817_v55 = vmul.f32 0.35355338, %v618_v52 }
 0x1ca   :  { %v345_v50 = vpop.f32.mrf.mxu1 }
 0x1cb   :  { %v381_v51 = vmul.f32 0.35355338, %v345_v50  ;;  %v2973_v59 = vsel %vm2926_vm2, -inf, %v817_v55  ;;  %v405_v50 = vsel %vm161_vm1, %v3041_v46, -inf }
 0x1cc   :  { %v833_v62 = vsel %vm161_vm1, %v2973_v59, -inf }
 0x1cd   :  { %v2967_v53 = vsel %vm2926_vm2, -inf, %v381_v51 }
 0x1ce   :  { %v411_v54 = vsel %vm161_vm1, %v2967_v53, -inf }
 0x1cf   :  { %412 = vmax.xlane.f32.xlu1 %v411_v54 }
 0x1d0   :  { %v702_v4 = vpop.f32.mrf.mxu3 }
 0x1d2   :  { %v646_v56 = vpop.f32.mrf.mxu1 }
 0x1d3   :  { %v818_v58 = vmul.f32 0.35355338, %v646_v56 }
 0x1d5   :  { %v2977_v60 = vsel %vm2926_vm2, -inf, %v818_v58 }
 0x1d6   :  { %v836_v61 = vsel %vm161_vm1, %v2977_v60, -inf }
 0x1d7   :  { %837 = vmax.xlane.f32.xlu2 %v836_v61  ;;  %834 = vmax.xlane.f32.xlu1 %v833_v62 }
 0x1d8   :  { %v2983_v0 = vpop.f32.mrf.mxu2 }
 0x1d9   :  { %v786_v8 = vpop.f32.mrf.mxu3 }
 0x1da   :  { %v730_v63 = vpop.f32.mrf.mxu1 }
 0x1db   :  { %v821_v1 = vmul.f32 0.35355338, %v730_v63  ;;  %v823_v63 = vmul.f32 0.35355338, %v786_v8 }
 0x1dd   :  { %v2987_v2 = vsel %vm2926_vm2, -inf, %v821_v1  ;;  %v3071_v11 = vsel %vm2926_vm2, -inf, %v823_v63 }
 0x1de   :  { %v845_v3 = vsel %vm161_vm1, %v2987_v2, -inf }
 0x1df   :  { %846 = vmax.xlane.f32.xlu1 %v845_v3 }
 0x1e0   :  { %v674_v5 = vpop.f32.mrf.mxu2 }
 0x1e1   :  { %v3007_v16 = vpop.f32.mrf.mxu3  ;;  %v819_v51 = vmul.f32 0.35355338, %v674_v5  ;;  %v820_v5 = vmul.f32 0.35355338, %v702_v4 }
 0x1e3   :  { %v3053_v55 = vsel %vm2926_vm2, -inf, %v819_v51 }
 0x1e4   :  { %v839_v62 = vsel %vm161_vm1, %v3053_v55, -inf }
 0x1e8   :  { %v2997_v12 = vpop.f32.mrf.mxu2 }
 0x1e9   :  { %v1170_v30 = vpop.f32.mrf.mxu3 }
 0x1ea   :  { %v210_v6 = vpop.f32.mrf.mxu0  ;;  %v1261_v32 = vmul.f32 0.35355338, %v1170_v30 }
 0x1eb   :  { %v376_v7 = vmul.f32 0.35355338, %v210_v6 }
 0x1ec   :  { %v3025_v35 = vsel %vm2926_vm2, -inf, %v1261_v32 }
 0x1ed   :  { %v2993_v9 = vsel %vm2926_vm2, -inf, %v376_v7  ;;  %v1285_v38 = vsel %vm161_vm1, %v3025_v35, -inf }
 0x1ee   :  { %v396_v10 = vsel %vm161_vm1, %v2993_v9, -inf }
 0x1ef   :  { %397 = vmax.xlane.f32.xlu0 %v396_v10  ;;  %v2999_v13 = vpop.f32.mrf.mxu1 }
 0x1f0   :  { %v1058_v20 = vpop.f32.mrf.mxu2 }
 0x1f1   :  { %v1257_v27 = vmul.f32 0.35355338, %v1058_v20  ;;  %v824_v20 = vmul.f32 0.35355338, %v2999_v13 }
 0x1f2   :  { %v395_v6 = vpop.xlane.xlu2 %394 }
 0x1f3   :  { %v3017_v29 = vsel %vm2926_vm2, -inf, %v1257_v27  ;;  %v417_v8 = vsub.f32 %v2936_v21, %v395_v6  ;;  %v382_v21 = vmul.f32 0.35355338, %v2983_v0  ;;  %v3092_v32 = vsel %vm2926_vm2, -inf, %v824_v20 }
 0x1f4   :  { %v1273_v31 = vsel %vm161_vm1, %v3017_v29, -inf  ;;  %v854_v0 = vsel %vm161_vm1, %v3092_v32, -inf }
 0x1f6   :  { %v1254_v36 = vpop.f32.mrf.mxu3 }
 0x1f7   :  { %403 = vmax.xlane.f32.xlu0 %v402_v15  ;;  %v1114_v17 = vpop.f32.mrf.mxu1  ;;  %v1264_v40 = vmul.f32 0.35355338, %v1254_v36  ;;  %v1258_v36 = vmul.f32 0.35355338, %v3007_v16 }
 0x1f8   :  { %v1259_v18 = vmul.f32 0.35355338, %v1114_v17  ;;  %v3021_v33 = vpop.f32.mrf.mxu2  ;;  %v3078_v17 = vsel %vm2926_vm2, -inf, %v820_v5 }
 0x1f9   :  { %v3037_v45 = vsel %vm2926_vm2, -inf, %v1264_v40  ;;  %v842_v27 = vsel %vm161_vm1, %v3078_v17, -inf  ;;  %v3109_v42 = vsel %vm2926_vm2, -inf, %v1258_v36 }
 0x1fa   :  { %v3011_v23 = vsel %vm2926_vm2, -inf, %v1259_v18  ;;  %v1294_v47 = vsel %vm161_vm1, %v3037_v45, -inf  ;;  %v851_v18 = vsel %vm161_vm1, %v3071_v11, -inf }
 0x1fb   :  { %v1279_v25 = vsel %vm161_vm1, %v3011_v23, -inf }
 0x1fc   :  { %1280 = vmax.xlane.f32.xlu1 %v1279_v25  ;;  %v425_v25 = vmul.f32 1.442695, %v417_v8 }
 0x1fe   :  { %2384 = vpow2.f32 %v425_v25 }
 0x1ff   :  { %v1198_v30 = vpop.f32.mrf.mxu1 }
 0x200   :  { %v1226_v44 = vpop.f32.mrf.mxu2 }
 0x201   :  { %v1263_v49 = vmul.f32 0.35355338, %v1226_v44 }
 0x203   :  { %v3049_v52 = vsel %vm2926_vm2, -inf, %v1263_v49  ;;  %v1276_v49 = vsel %vm161_vm1, %v3109_v42, -inf }
 0x204   :  { %1274 = vmax.xlane.f32.xlu1 %v1273_v31  ;;  %v1291_v58 = vsel %vm161_vm1, %v3049_v52, -inf  ;;  %v3105_v40 = vpop.eup %2384 }
 0x207   :  { %v1498_v44 = vpop.f32.mrf.mxu1 }
 0x208   :  { %v1582_v34 = vpop.f32.mrf.mxu0  ;;  %v1526_v54 = vpop.f32.mrf.mxu2  ;;  %v1697_v5 = vmul.f32 0.35355338, %v1498_v44 }
 0x209   :  { %v1700_v37 = vmul.f32 0.35355338, %v1582_v34  ;;  %v1698_v61 = vmul.f32 0.35355338, %v1526_v54  ;;  %v3098_v34 = vsel %vm2926_vm2, -inf, %v382_v21 }
 0x20a   :  { %v1260_v54 = vmul.f32 0.35355338, %v3021_v33 }
 0x20b   :  { %v3031_v39 = vsel %vm2926_vm2, -inf, %v1700_v37  ;;  %v3067_v7 = vsel %vm2926_vm2, -inf, %v1698_v61  ;;  %v414_v37 = vsel %vm161_vm1, %v3098_v34, -inf }
 0x20c   :  { %1286 = vmax.xlane.f32.xlu1 %v1285_v38  ;;  %v1722_v41 = vsel %vm161_vm1, %v3031_v39, -inf  ;;  %v1716_v15 = vsel %vm161_vm1, %v3067_v7, -inf  ;;  %v1262_v38 = vmul.f32 0.35355338, %v1198_v30 }
 0x20d   :  { %1723 = vmax.xlane.f32.xlu0 %v1722_v41 }
 0x20e   :  { %v3115_v16 = vsel %vm2926_vm2, -inf, %v1262_v38 }
 0x20f   :  { %v1288_v51 = vsel %vm161_vm1, %v3115_v16, -inf }
 0x213   :  { %v1610_v61 = vpop.f32.mrf.mxu1 }
 0x214   :  { %1295 = vmax.xlane.f32.xlu1 %v1294_v47  ;;  %v441_v47 = vsel %vm161_vm1, %v3105_v40, 0.0  ;;  %v1701_v33 = vmul.f32 0.35355338, %v1610_v61 }
 0x215   :  { %406 = vmax.xlane.f32.xlu0 %v405_v50  ;;  %v1638_v10 = vpop.f32.mrf.mxu2  ;;  %v822_v50 = vmul.f32 0.35355338, %v2997_v12  ;;  %v3131_v12 = vsel %vm2926_vm2, -inf, %v1260_v54 }
 0x216   :  { %v1702_v4 = vmul.f32 0.35355338, %v1638_v10  ;;  %v1554_v10 = vpop.f32.mrf.mxu3 }
 0x217   :  { %v1699_v21 = vmul.f32 0.35355338, %v1554_v10 }
 0x218   :  { %v3088_v31 = vsel %vm2926_vm2, -inf, %v1702_v4  ;;  %v401_v41 = vpop.xlane.xlu2 %400 }
 0x219   :  { %v1728_v13 = vsel %vm161_vm1, %v3088_v31, -inf  ;;  %v3160_v38 = vsel %vm2926_vm2, -inf, %v1699_v21 }
 0x21a   :  { %v1694_v56 = vpop.f32.mrf.mxu0 }
 0x21b   :  { %v1704_v57 = vmul.f32 0.35355338, %v1694_v56 }
 0x21c   :  { %1292 = vmax.xlane.f32.xlu1 %v1291_v58  ;;  %v3126_v58 = vsel %vm2926_vm2, -inf, %v822_v50 }
 0x21d   :  { %840 = vmax.xlane.f32.xlu0 %v839_v62  ;;  %v3061_v1 = vsel %vm2926_vm2, -inf, %v1704_v57  ;;  %v419_v62 = vsub.f32 %v2955_v43, %v401_v41  ;;  %v3139_v43 = vsel %vm2926_vm2, -inf, %v1701_v33 }
 0x21e   :  { %v1734_v3 = vsel %vm161_vm1, %v3061_v1, -inf  ;;  %v1725_v20 = vsel %vm161_vm1, %v3139_v43, -inf  ;;  %v1666_v41 = vpop.f32.mrf.mxu3 }
 0x21f   :  { %1735 = vmax.xlane.f32.xlu2 %v1734_v3  ;;  %v848_v3 = vsel %vm161_vm1, %v3126_v58, -inf  ;;  %v429_v6 = vmul.f32 1.442695, %v419_v62  ;;  %v1703_v50 = vmul.f32 0.35355338, %v1666_v41 }
 0x224   :  { %1717 = vmax.xlane.f32.xlu1 %v1716_v15 }
 0x225   :  { %852 = vmax.xlane.f32.xlu0 %v851_v18  ;;  %v3146_v18 = vsel %vm2926_vm2, -inf, %v1697_v5 }
 0x227   :  { %843 = vmax.xlane.f32.xlu2 %v842_v27  ;;  %v1713_v27 = vsel %vm161_vm1, %v3146_v18, -inf }
 0x22c   :  { %1729 = vmax.xlane.f32.xlu1 %v1728_v13 }
 0x22d   :  { %855 = vmax.xlane.f32.xlu0 %v854_v0 }
 0x22f   :  { %415 = vmax.xlane.f32.xlu2 %v414_v37 }
 0x234   :  { %442 = vadd.xlane.f32.xlu1 %v441_v47 }
 0x235   :  { %1277 = vmax.xlane.f32.xlu0 %v1276_v49  ;;  %v1719_v49 = vsel %vm161_vm1, %v3160_v38, -inf }
 0x237   :  { %1289 = vmax.xlane.f32.xlu2 %v1288_v51 }
 0x238   :  { %v410_v56 = vpop.xlane.xlu2 %409 }
 0x239   :  { %v422_v57 = vsub.f32 %v2961_v48, %v410_v56  ;;  %v1282_v48 = vsel %vm161_vm1, %v3131_v12, -inf  ;;  %v3171_v56 = vsel %vm2926_vm2, -inf, %v1703_v50 }
 0x23b   :  { %v435_v63 = vmul.f32 1.442695, %v422_v57 }
 0x23d   :  { %2386 = vpow2.f32 %v435_v63  ;;  %849 = vmax.xlane.f32.xlu0 %v848_v3  ;;  %v1731_v63 = vsel %vm161_vm1, %v3171_v56, -inf }
 0x23e   :  { %2388 = vpow2.f32 %v429_v6 }
 0x23f   :  { %1283 = vmax.xlane.f32.xlu2 %v1282_v48 }
 0x242   :  { %v413_v8 = vpop.xlane.xlu1 %412 }
 0x243   :  { %v3141_v15 = vpop.eup %2386  ;;  %v423_v4 = vsub.f32 %v2967_v53, %v413_v8 }
 0x244   :  { %4248 = vst [vmem:[#allocation15_spill] sm:$0xff] %v3141_v15  ;;  %v456_v25 = vsel %vm161_vm1, %v3141_v15, 0.0  ;;  %v3154_v13 = vpop.eup %2388 }
 0x245   :  { %1726 = vmax.xlane.f32.xlu0 %v1725_v20  ;;  %457 = vadd.xlane.f32.xlu1 %v456_v25  ;;  %v437_v30 = vmul.f32 1.442695, %v423_v4  ;;  %v447_v44 = vsel %vm161_vm1, %v3154_v13, 0.0 }
 0x247   :  { %1714 = vmax.xlane.f32.xlu2 %v1713_v27  ;;  %2390 = vpow2.f32 %v437_v30 }
 0x24a   :  { %v838_v53 = vpop.xlane.xlu2 %837  ;;  %v835_v0 = vpop.xlane.xlu1 %834 }
 0x24b   :  { %v858_v36 = vsub.f32 %v2977_v60, %v838_v53  ;;  %v857_v37 = vsub.f32 %v2973_v59, %v835_v0 }
 0x24d   :  { %v867_v47 = vmul.f32 1.442695, %v858_v36  ;;  %448 = vadd.xlane.f32.xlu0 %v447_v44  ;;  %v865_v51 = vmul.f32 1.442695, %v857_v37  ;;  %v3166_v60 = vpop.eup %2390 }
 0x24e   :  { %v459_v57 = vsel %vm161_vm1, %v3166_v60, 0.0 }
 0x24f   :  { %2392 = vpow2.f32 %v867_v47  ;;  %1720 = vmax.xlane.f32.xlu2 %v1719_v49 }
 0x250   :  { %2394 = vpow2.f32 %v865_v51 }
 0x252   :  { %v847_v59 = vpop.xlane.xlu1 %846 }
 0x253   :  { %v861_v54 = vsub.f32 %v2987_v2, %v847_v59 }
 0x255   :  { %v3175_v61 = vpop.eup %2392  ;;  %460 = vadd.xlane.f32.xlu0 %v459_v57  ;;  %v873_v3 = vmul.f32 1.442695, %v861_v54 }
 0x256   :  { %v884_v62 = vsel %vm161_vm1, %v3175_v61, 0.0  ;;  %v3181_v2 = vpop.eup %2394 }
 0x257   :  { %885 = vadd.xlane.f32.xlu1 %v884_v62  ;;  %1732 = vmax.xlane.f32.xlu2 %v1731_v63  ;;  %2396 = vpow2.f32 %v873_v3  ;;  %v881_v19 = vsel %vm161_vm1, %v3181_v2, 0.0 }
 0x25d   :  { %882 = vadd.xlane.f32.xlu0 %v881_v19  ;;  %v3185_v33 = vpop.eup %2396 }
 0x25e   :  { %v893_v6 = vsel %vm161_vm1, %v3185_v33, 0.0 }
 0x262   :  { %v398_v48 = vpop.xlane.xlu0 %397 }
 0x263   :  { %v418_v5 = vsub.f32 %v2993_v9, %v398_v48 }
 0x265   :  { %v427_v10 = vmul.f32 1.442695, %v418_v5  ;;  %894 = vadd.xlane.f32.xlu0 %v893_v6 }
 0x267   :  { %2398 = vpow2.f32 %v427_v10 }
 0x26a   :  { %v404_v8 = vpop.xlane.xlu0 %403 }
 0x26b   :  { %v420_v4 = vsub.f32 %v3003_v14, %v404_v8 }
 0x26d   :  { %v3191_v20 = vpop.eup %2398  ;;  %v431_v25 = vmul.f32 1.442695, %v420_v4 }
 0x26e   :  { %v444_v27 = vsel %vm161_vm1, %v3191_v20, 0.0 }
 0x26f   :  { %2400 = vpow2.f32 %v431_v25  ;;  %445 = vadd.xlane.f32.xlu2 %v444_v27  ;;  %v3195_v21 = vpop.xlane.xlu1 %1280 }
 0x275   :  { %v3197_v9 = vpop.eup %2400 }
 0x276   :  { %v450_v30 = vsel %vm161_vm1, %v3197_v9, 0.0 }
 0x277   :  { %451 = vadd.xlane.f32.xlu2 %v450_v30  ;;  %v1275_v53 = vpop.xlane.xlu1 %1274 }
 0x278   :  { %v1297_v0 = vsub.f32 %v3017_v29, %v1275_v53 }
 0x27a   :  { %v1305_v14 = vmul.f32 1.442695, %v1297_v0 }
 0x27c   :  { %2402 = vpow2.f32 %v1305_v14 }
 0x27f   :  { %v1287_v36 = vpop.xlane.xlu1 %1286 }
 0x280   :  { %v1724_v37 = vpop.xlane.xlu0 %1723  ;;  %v1301_v41 = vsub.f32 %v3025_v35, %v1287_v36 }
 0x281   :  { %v1740_v44 = vsub.f32 %v3031_v39, %v1724_v37 }
 0x282   :  { %v3204_v47 = vpop.eup %2402  ;;  %v1313_v49 = vmul.f32 1.442695, %v1301_v41 }
 0x283   :  { %v1751_v50 = vmul.f32 1.442695, %v1740_v44  ;;  %v1321_v51 = vsel %vm161_vm1, %v3204_v47, 0.0 }
 0x284   :  { %2404 = vpow2.f32 %v1313_v49  ;;  %1322 = vadd.xlane.f32.xlu0 %v1321_v51 }
 0x285   :  { %2406 = vpow2.f32 %v1751_v50 }
 0x287   :  { %v1296_v59 = vpop.xlane.xlu1 %1295 }
 0x288   :  { %v407_v29 = vpop.xlane.xlu0 %406  ;;  %v1304_v54 = vsub.f32 %v3037_v45, %v1296_v59 }
 0x289   :  { %v421_v57 = vsub.f32 %v3041_v46, %v407_v29 }
 0x28a   :  { %v3210_v62 = vpop.eup %2404  ;;  %v1319_v35 = vmul.f32 1.442695, %v1304_v54 }
 0x28b   :  { %v3212_v39 = vpop.eup %2406  ;;  %v433_v63 = vmul.f32 1.442695, %v421_v57  ;;  %v1333_v3 = vsel %vm161_vm1, %v3210_v62, 0.0 }
 0x28c   :  { %2408 = vpow2.f32 %v1319_v35  ;;  %v1770_v19 = vsel %vm161_vm1, %v3212_v39, 0.0  ;;  %1334 = vadd.xlane.f32.xlu0 %v1333_v3 }
 0x28d   :  { %2410 = vpow2.f32 %v433_v63  ;;  %1771 = vadd.xlane.f32.xlu2 %v1770_v19 }
 0x290   :  { %v841_v48 = vpop.xlane.xlu0 %840 }
 0x292   :  { %v3218_v45 = vpop.eup %2408  ;;  %v1736_v46 = vpop.xlane.xlu2 %1735 }
 0x293   :  { %v3220_v5 = vpop.eup %2410  ;;  %v1744_v6 = vsub.f32 %v3061_v1, %v1736_v46  ;;  %v1342_v10 = vsel %vm161_vm1, %v3218_v45, 0.0 }
 0x294   :  { %v453_v8 = vsel %vm161_vm1, %v3220_v5, 0.0  ;;  %1343 = vadd.xlane.f32.xlu0 %v1342_v10 }
 0x295   :  { %v1759_v4 = vmul.f32 1.442695, %v1744_v6  ;;  %454 = vadd.xlane.f32.xlu2 %v453_v8 }
 0x297   :  { %2412 = vpow2.f32 %v1759_v4 }
 0x298   :  { %v853_v25 = vpop.xlane.xlu0 %852 }
 0x299   :  { %v863_v27 = vsub.f32 %v3071_v11, %v853_v25 }
 0x29a   :  { %v844_v30 = vpop.xlane.xlu2 %843 }
 0x29b   :  { %v877_v53 = vmul.f32 1.442695, %v863_v27  ;;  %v860_v0 = vsub.f32 %v3078_v17, %v844_v30  ;;  %v859_v17 = vsub.f32 %v3053_v55, %v841_v48 }
 0x29d   :  { %v3229_v14 = vpop.eup %2412  ;;  %2414 = vpow2.f32 %v877_v53  ;;  %v871_v1 = vmul.f32 1.442695, %v860_v0 }
 0x29e   :  { %v1782_v36 = vsel %vm161_vm1, %v3229_v14, 0.0 }
 0x29f   :  { %2416 = vpow2.f32 %v871_v1  ;;  %1783 = vadd.xlane.f32.xlu1 %v1782_v36 }
 0x2a0   :  { %v856_v37 = vpop.xlane.xlu0 %855 }
 0x2a1   :  { %v864_v41 = vsub.f32 %v3092_v32, %v856_v37  ;;  %v869_v32 = vmul.f32 1.442695, %v859_v17 }
 0x2a2   :  { %v416_v44 = vpop.xlane.xlu2 %415 }
 0x2a3   :  { %v3234_v49 = vpop.eup %2414  ;;  %v879_v11 = vmul.f32 1.442695, %v864_v41  ;;  %v424_v50 = vsub.f32 %v3098_v34, %v416_v44 }
 0x2a4   :  { %v899_v51 = vsel %vm161_vm1, %v3234_v49, 0.0 }
 0x2a5   :  { %v3240_v59 = vpop.eup %2416  ;;  %2418 = vpow2.f32 %v879_v11  ;;  %v439_v29 = vmul.f32 1.442695, %v424_v50  ;;  %900 = vadd.xlane.f32.xlu2 %v899_v51 }
 0x2a6   :  { %v890_v54 = vsel %vm161_vm1, %v3240_v59, 0.0 }
 0x2a7   :  { %2420 = vpow2.f32 %v439_v29  ;;  %891 = vadd.xlane.f32.xlu1 %v890_v54 }
 0x2a8   :  { %v1278_v57 = vpop.xlane.xlu0 %1277  ;;  %2422 = vpow2.f32 %v869_v32 }
 0x2a9   :  { %v1298_v35 = vsub.f32 %v3109_v42, %v1278_v57 }
 0x2aa   :  { %v1290_v34 = vpop.xlane.xlu2 %1289 }
 0x2ab   :  { %v3245_v63 = vpop.eup %2418  ;;  %v1307_v55 = vmul.f32 1.442695, %v1298_v35  ;;  %v1302_v3 = vsub.f32 %v3115_v16, %v1290_v34  ;;  %v1299_v16 = vsub.f32 %v3011_v23, %v3195_v21 }
 0x2ac   :  { %v902_v19 = vsel %vm161_vm1, %v3245_v63, 0.0 }
 0x2ad   :  { %v3250_v48 = vpop.eup %2420  ;;  %2424 = vpow2.f32 %v1307_v55  ;;  %903 = vadd.xlane.f32.xlu2 %v902_v19  ;;  %v1315_v6 = vmul.f32 1.442695, %v1302_v3  ;;  %v1309_v0 = vmul.f32 1.442695, %v1299_v16 }
 0x2ae   :  { %v462_v46 = vsel %vm161_vm1, %v3250_v48, 0.0  ;;  %v3255_v8 = vpop.eup %2422 }
 0x2af   :  { %463 = vadd.xlane.f32.xlu1 %v462_v46  ;;  %2426 = vpow2.f32 %v1315_v6 }
 0x2b0   :  { %v850_v42 = vpop.xlane.xlu0 %849 }
 0x2b1   :  { %v862_v10 = vsub.f32 %v3126_v58, %v850_v42  ;;  %v887_v58 = vsel %vm161_vm1, %v3255_v8, 0.0 }
 0x2b2   :  { %v1284_v4 = vpop.xlane.xlu2 %1283 }
 0x2b3   :  { %v3257_v25 = vpop.eup %2424  ;;  %v875_v27 = vmul.f32 1.442695, %v862_v10  ;;  %v1300_v53 = vsub.f32 %v3131_v12, %v1284_v4  ;;  %v1293_v12 = vpop.xlane.xlu1 %1292 }
 0x2b4   :  { %4249 = vst [vmem:[#allocation16_spill] sm:$0xff] %v3257_v25  ;;  %v1324_v30 = vsel %vm161_vm1, %v3257_v25, 0.0 }
 0x2b5   :  { %2428 = vpow2.f32 %v875_v27  ;;  %1325 = vadd.xlane.f32.xlu2 %v1324_v30  ;;  %v1311_v36 = vmul.f32 1.442695, %v1300_v53  ;;  %v3266_v37 = vpop.eup %2426 }
 0x2b6   :  { %4250 = vst [vmem:[#allocation17_spill] sm:$0xff] %v3266_v37  ;;  %2430 = vpow2.f32 %v1309_v0  ;;  %v1336_v50 = vsel %vm161_vm1, %v3266_v37, 0.0 }
 0x2b7   :  { %888 = vadd.xlane.f32.xlu1 %v887_v58  ;;  %2432 = vpow2.f32 %v1311_v36 }
 0x2b8   :  { %v1727_v1 = vpop.xlane.xlu0 %1726 }
 0x2b9   :  { %v1741_v21 = vsub.f32 %v3139_v43, %v1727_v1 }
 0x2ba   :  { %v1715_v41 = vpop.xlane.xlu2 %1714 }
 0x2bb   :  { %v3268_v23 = vpop.eup %2428  ;;  %v1737_v11 = vsub.f32 %v3146_v18, %v1715_v41  ;;  %v1753_v17 = vmul.f32 1.442695, %v1741_v21  ;;  %v1303_v18 = vsub.f32 %v3049_v52, %v1293_v12  ;;  %v1718_v55 = vpop.xlane.xlu1 %1717 }
 0x2bc   :  { %4251 = vst [vmem:[#allocation18_spill] sm:$0xff] %v3268_v23  ;;  %v896_v44 = vsel %vm161_vm1, %v3268_v23, 0.0  ;;  %v3276_v51 = vpop.eup %2430  ;;  %v1738_v10 = vsub.f32 %v3067_v7, %v1718_v55 }
 0x2bd   :  { %897 = vadd.xlane.f32.xlu2 %v896_v44  ;;  %v1745_v29 = vmul.f32 1.442695, %v1737_v11  ;;  %v3278_v32 = vpop.eup %2432  ;;  %2434 = vpow2.f32 %v1753_v17  ;;  %v1327_v57 = vsel %vm161_vm1, %v3276_v51, 0.0  ;;  %v1317_v19 = vmul.f32 1.442695, %v1303_v18 }
 0x2be   :  { %v1330_v34 = vsel %vm161_vm1, %v3278_v32, 0.0 }
 0x2bf   :  { %1337 = vadd.xlane.f32.xlu1 %v1336_v50  ;;  %2436 = vpow2.f32 %v1745_v29 }
 0x2c0   :  { %v3300_v53 = vpop.xlane.xlu0 %448 }
 0x2c1   :  { %vm498_vm7 = vweird.f32 %v3300_v53 }
 0x2c2   :  { %v1721_v54 = vpop.xlane.xlu2 %1720 }
 0x2c3   :  { %v1739_v43 = vsub.f32 %v3160_v38, %v1721_v54  ;;  %v3286_v3 = vpop.eup %2434  ;;  %v1730_v30 = vpop.xlane.xlu1 %1729 }
 0x2c4   :  { %v1773_v52 = vsel %vm161_vm1, %v3286_v3, 0.0  ;;  %v1742_v7 = vsub.f32 %v3088_v31, %v1730_v30 }
 0x2c5   :  { %v1749_v35 = vmul.f32 1.442695, %v1739_v43  ;;  %1328 = vadd.xlane.f32.xlu2 %v1327_v57  ;;  %v3288_v6 = vpop.eup %2436 }
 0x2c6   :  { %v1761_v16 = vsel %vm161_vm1, %v3288_v6, 0.0  ;;  %v1755_v41 = vmul.f32 1.442695, %v1742_v7 }
 0x2c7   :  { %2438 = vpow2.f32 %v1749_v35  ;;  %1331 = vadd.xlane.f32.xlu1 %v1330_v34 }
 0x2c8   :  { %2440 = vpow2.f32 %v1317_v19  ;;  %v3313_v12 = vpop.xlane.xlu0 %460 }
 0x2c9   :  { %vm554_vm11 = vweird.f32 %v3313_v12 }
 0x2ca   :  { %v1733_v46 = vpop.xlane.xlu2 %1732 }
 0x2cb   :  { %v1743_v38 = vsub.f32 %v3171_v56, %v1733_v46  ;;  %v1747_v56 = vmul.f32 1.442695, %v1738_v10  ;;  %v443_v44 = vpop.xlane.xlu1 %442 }
 0x2cc   :  { %vm470_vm4 = vweird.f32 %v443_v44 }
 0x2cd   :  { %v3293_v42 = vpop.eup %2438  ;;  %v1757_v4 = vmul.f32 1.442695, %v1743_v38  ;;  %1774 = vadd.xlane.f32.xlu2 %v1773_v52 }
 0x2ce   :  { %v1767_v27 = vsel %vm161_vm1, %v3293_v42, 0.0  ;;  %v3302_v58 = vpop.eup %2440 }
 0x2cf   :  { %2442 = vpow2.f32 %v1757_v4  ;;  %1762 = vadd.xlane.f32.xlu1 %v1761_v16  ;;  %1768 = vadd.xlane.f32.xlu0 %v1767_v27  ;;  %v1339_v36 = vsel %vm161_vm1, %v3302_v58, 0.0  ;;  %v476_v16 = vand.u32 2147483648, %v443_v44 }
 0x2d0   :  { %2444 = vpow2.f32 %v1747_v56  ;;  %v3321_v29 = vpop.xlane.xlu0 %882  ;;  %v474_v56 = vand.u32 2147483647, %v443_v44 }
 0x2d1   :  { %2446 = vpow2.f32 %v1755_v41 }
 0x2d2   :  { %2448 = vrcp.f32 %v443_v44  ;;  %vm475_vm6 = vcmp.eq.f32.partialorder %v474_v56, 8.507059e+37 }
 0x2d3   :  { %v3319_v17 = vpop.xlane.xlu1 %457  ;;  %2450 = vrcp.f32 %v3300_v53 }
 0x2d4   :  { %2452 = vrcp.f32 %v3319_v17  ;;  %vm540_vm15 = vweird.f32 %v3319_v17 }
 0x2d5   :  { %v3304_v0 = vpop.eup %2442  ;;  %2454 = vrcp.f32 %v3313_v12 }
 0x2d6   :  { %4252 = vst [vmem:[#allocation19_spill] sm:$0xff] %v3304_v0  ;;  %v1779_v1 = vsel %vm161_vm1, %v3304_v0, 0.0  ;;  %v3311_v21 = vpop.eup %2444  ;;  %2456 = vrcp.f32 %v3321_v29 }
 0x2d7   :  { %1780 = vadd.xlane.f32.xlu1 %v1779_v1  ;;  %1340 = vadd.xlane.f32.xlu0 %v1339_v36  ;;  %4253 = vst [vmem:[#allocation20_spill] sm:$0xff] %v3311_v21  ;;  %v1764_v11 = vsel %vm161_vm1, %v3311_v21, 0.0  ;;  %v3317_v31 = vpop.eup %2446  ;;  %v914_v21 = vand.u32 2147483647, %v3321_v29 }
 0x2d8   :  { %4254 = vst [vmem:[#allocation21_spill] sm:$0xff] %v3317_v31  ;;  %v2449_v50 = vpop.eup %2448  ;;  %v1776_v54 = vsel %vm161_vm1, %v3317_v31, 0.0  ;;  %v3338_v55 = vpop.xlane.xlu0 %894 }
 0x2d9   :  { %v466_v43 = vmul.f32 %v2449_v50, %v443_v44  ;;  %v3335_v34 = vpop.eup %2450  ;;  %vm471_vm3 = vweird.f32 %v2449_v50 }
 0x2da   :  { %v3340_v19 = vpop.eup %2452  ;;  %v494_v38 = vmul.f32 %v3335_v34, %v3300_v53  ;;  %vm472_vm5 = vmor %vm470_vm4, %vm471_vm3  ;;  %vm499_vm8 = vweird.f32 %v3335_v34 }
 0x2db   :  { %v467_v57 = vsub.f32 1.0, %v466_v43  ;;  %v3330_v18 = vpop.xlane.xlu1 %885  ;;  %v3344_v46 = vpop.eup %2454  ;;  %v536_v10 = vmul.f32 %v3340_v19, %v3319_v17  ;;  %vm541_vm10 = vweird.f32 %v3340_v19  ;;  %vm3410_vm12 = vmor %vm498_vm7, %vm499_vm8 }
 0x2dc   :  { %2458 = vrcp.f32 %v3330_v18  ;;  %v3350_v4 = vpop.eup %2456  ;;  %v495_v30 = vsub.f32 1.0, %v494_v38  ;;  %vm555_vm13 = vweird.f32 %v3344_v46  ;;  %v930_v15 = vand.u32 2147483648, %v3330_v18 }
 0x2dd   :  { %2460 = vrcp.f32 %v3338_v55  ;;  %v537_v1 = vsub.f32 1.0, %v536_v10  ;;  %v906_v36 = vmul.f32 %v3350_v4, %v3321_v29  ;;  %vm911_vm2 = vweird.f32 %v3350_v4  ;;  %vm3434_vm3 = vmor %vm554_vm11, %vm555_vm13 }
 0x2de   :  { %v496_v38 = vmul.f32 %v3335_v34, %v495_v30  ;;  %vm924_vm4 = vweird.f32 %v3330_v18  ;;  %v931_v25 = vor.u32 1.1754944e-38, %v930_v15  ;;  %vm3462_vm11 = vcmp.eq.f32.partialorder %v914_v21, 8.507059e+37  ;;  %vm3498_vm13 = vmor %vm540_vm15, %vm541_vm10 }
 0x2df   :  { %1765 = vadd.xlane.f32.xlu0 %v1764_v11  ;;  %v477_v11 = vor.u32 1.1754944e-38, %v476_v16  ;;  %v538_v10 = vmul.f32 %v3340_v19, %v537_v1  ;;  %v504_v16 = vand.u32 2147483648, %v3300_v53  ;;  %v907_v31 = vsub.f32 1.0, %v906_v36 }
 0x2e0   :  { %v497_v1 = vadd.f32 %v3335_v34, %v496_v38 }
 0x2e1   :  { %v3388_v36 = vadd.f32 %v3340_v19, %v538_v10 }
 0x2e2   :  { %v3333_v35 = vpop.xlane.xlu2 %445  ;;  %v3353_v27 = vpop.eup %2458  ;;  %v501_v37 = vsel %vm3410_vm12, %v3335_v34, %v497_v1 }
 0x2e3   :  { %2462 = vrcp.f32 %v3333_v35 }
 0x2e5   :  { %2103 = vrot.lane.b32.xlu2 %v2787_v28, %s2652_s19  ;;  %v468_v28 = vmul.f32 %v2449_v50, %v467_v57  ;;  %v2377_v57 = vpack.i.bf16 %v2765_v24, %v2757_v22 }
 0x2e7   :  { %1777 = vadd.xlane.f32.xlu0 %v1776_v54  ;;  %v469_v52 = vadd.f32 %v2449_v50, %v468_v28  ;;  %v920_v54 = vmul.f32 %v3353_v27, %v3330_v18  ;;  %v3367_v28 = vpop.eup %2460 }
 0x2e8   :  { %v962_v30 = vmul.f32 %v3367_v28, %v3338_v55 }
 0x2e9   :  { %v473_v7 = vsel %vm472_vm5, %v2449_v50, %v469_v52  ;;  %v502_v52 = vand.u32 2147483647, %v3300_v53  ;;  %v921_v56 = vsub.f32 1.0, %v920_v54  ;;  %v908_v54 = vmul.f32 %v3350_v4, %v907_v31 }
 0x2ea   :  { %v3363_v43 = vpop.xlane.xlu2 %451  ;;  %v478_v50 = vsel %vm475_vm6, %v477_v11, %v473_v7  ;;  %v505_v11 = vor.u32 1.1754944e-38, %v504_v16  ;;  %v928_v53 = vand.u32 2147483647, %v3330_v18  ;;  %vm925_vm5 = vweird.f32 %v3353_v27 }
 0x2eb   :  { %2464 = vrcp.f32 %v3363_v43  ;;  %v3377_v22 = vmul.f32 %v3105_v40, %v478_v50  ;;  %vm3390_vm9 = vcmp.eq.f32.partialorder %v502_v52, 8.507059e+37  ;;  %v560_v50 = vand.u32 2147483648, %v3313_v12  ;;  %vm3466_vm12 = vmor %vm924_vm4, %vm925_vm5 }
 0x2ec   :  { %v922_v38 = vmul.f32 %v3353_v27, %v921_v56  ;;  %v963_v56 = vsub.f32 1.0, %v962_v30  ;;  %vm910_vm6 = vweird.f32 %v3321_v29  ;;  %vm3452_vm7 = vcmp.eq.f32.partialorder %v928_v53, 8.507059e+37 }
 0x2ed   :  { %v561_v23 = vor.u32 1.1754944e-38, %v560_v50  ;;  %vm3458_vm8 = vmor %vm910_vm6, %vm911_vm2  ;;  %v970_v7 = vand.u32 2147483647, %v3338_v55  ;;  %vm484_vm2 = vweird.f32 %v3333_v35 }
 0x2ee   :  { %v923_v34 = vadd.f32 %v3353_v27, %v922_v38  ;;  %v506_v38 = vsel %vm3390_vm9, %v505_v11, %v501_v37  ;;  %vm967_vm9 = vweird.f32 %v3367_v28 }
 0x2ef   :  { %v3516_v31 = vmul.f32 %v3154_v13, %v506_v38  ;;  %vm971_vm15 = vcmp.eq.f32.partialorder %v970_v7, 8.507059e+37 }
 0x2f0   :  { %2077 = vrot.lane.b32.xlu1 %v2779_v26, %s2652_s19  ;;  %v550_v26 = vmul.f32 %v3344_v46, %v3313_v12  ;;  %v927_v50 = vsel %vm3466_vm12, %v3353_v27, %v923_v34  ;;  %v972_v27 = vand.u32 2147483648, %v3338_v55 }
 0x2f2   :  { %v551_v44 = vsub.f32 1.0, %v550_v26  ;;  %v558_v26 = vand.u32 2147483647, %v3313_v12  ;;  %v964_v12 = vmul.f32 %v3367_v28, %v963_v56 }
 0x2f4   :  { %v552_v24 = vmul.f32 %v3344_v46, %v551_v44  ;;  %vm3416_vm14 = vcmp.eq.f32.partialorder %v558_v26, 8.507059e+37  ;;  %v916_v26 = vand.u32 2147483648, %v3321_v29 }
 0x2f6   :  { %v553_v16 = vadd.f32 %v3344_v46, %v552_v24  ;;  %v909_v24 = vadd.f32 %v3350_v4, %v908_v54  ;;  %v917_v40 = vor.u32 1.1754944e-38, %v916_v26 }
 0x2f7   :  { %v3359_v41 = vpop.xlane.xlu0 %1322 }
 0x2f8   :  { %2466 = vrcp.f32 %v3359_v41  ;;  %v557_v54 = vsel %vm3434_vm3, %v3344_v46, %v553_v16  ;;  %v913_v37 = vsel %vm3458_vm8, %v3350_v4, %v909_v24  ;;  %v965_v4 = vadd.f32 %v3367_v28, %v964_v12 }
 0x2f9   :  { %v562_v21 = vsel %vm3416_vm14, %v561_v23, %v557_v54  ;;  %v918_v23 = vsel %vm3462_vm11, %v917_v40, %v913_v37  ;;  %vm966_vm14 = vweird.f32 %v3338_v55  ;;  %v4273_v54 = vand.u32 2147483648, %v3319_v17 }
 0x2fa   :  { %vm3520_vm10 = vmor %vm966_vm14, %vm967_vm9  ;;  %v3528_v29 = vmul.f32 %v3166_v60, %v562_v21  ;;  %v1017_v46 = vmul.f32 %v3181_v2, %v918_v23  ;;  %v490_v2 = vand.u32 2147483648, %v3333_v35  ;;  %vm1350_vm9 = vweird.f32 %v3359_v41 }
 0x2fb   :  { %2378 = vrot.lane.b32.xlu0 %v2377_v57, %s2652_s19  ;;  %v3397_v57 = vpop.eup %2462  ;;  %v3513_v12 = vor.u32 1.1754944e-38, %v4273_v54  ;;  %v969_v13 = vsel %vm3520_vm10, %v3367_v28, %v965_v4  ;;  %v516_v4 = vand.u32 2147483647, %v3363_v43 }
 0x2fc   :  { %v3406_v10 = vpop.eup %2464  ;;  %v480_v30 = vmul.f32 %v3397_v57, %v3333_v35  ;;  %vm485_vm3 = vweird.f32 %v3397_v57 }
 0x2fd   :  { %v508_v1 = vmul.f32 %v3406_v10, %v3363_v43  ;;  %vm513_vm4 = vweird.f32 %v3406_v10  ;;  %vm3559_vm5 = vmor %vm484_vm2, %vm485_vm3  ;;  %vm517_vm11 = vcmp.eq.f32.partialorder %v516_v4, 8.507059e+37 }
 0x2fe   :  { %v3448_v0 = vpop.eup %2466  ;;  %v481_v15 = vsub.f32 1.0, %v480_v30  ;;  %v932_v30 = vsel %vm3452_vm7, %v931_v25, %v927_v50  ;;  %v488_v50 = vand.u32 2147483647, %v3333_v35  ;;  %vm512_vm7 = vweird.f32 %v3363_v43 }
 0x2ff   :  { %v3395_v44 = vpop.xlane.xlu0 %1334  ;;  %v509_v16 = vsub.f32 1.0, %v508_v1  ;;  %v1346_v53 = vmul.f32 %v3448_v0, %v3359_v41  ;;  %v3537_v40 = vmul.f32 %v3175_v61, %v932_v30  ;;  %vm3581_vm8 = vmor %vm512_vm7, %vm513_vm4  ;;  %vm1351_vm12 = vweird.f32 %v3448_v0 }
 0x300   :  { %v3404_v52 = vpop.xlane.xlu2 %1771  ;;  %2468 = vrcp.f32 %v3395_v44  ;;  %v482_v34 = vmul.f32 %v3397_v57, %v481_v15  ;;  %v973_v15 = vor.u32 1.1754944e-38, %v972_v27  ;;  %vm3563_vm6 = vcmp.eq.f32.partialorder %v488_v50, 8.507059e+37  ;;  %vm3606_vm14 = vmor %vm1350_vm9, %vm1351_vm12 }
 0x301   :  { %2470 = vrcp.f32 %v3404_v52  ;;  %v510_v55 = vmul.f32 %v3406_v10, %v509_v16  ;;  %v1347_v38 = vsub.f32 1.0, %v1346_v53  ;;  %v3552_v53 = vadd.f32 %v1017_v46, %v3377_v22 }
 0x302   :  { %v483_v60 = vadd.f32 %v3397_v57, %v482_v34  ;;  %v974_v21 = vsel %vm971_vm15, %v973_v15, %v969_v13  ;;  %v518_v22 = vand.u32 2147483648, %v3363_v43  ;;  %v491_v46 = vor.u32 1.1754944e-38, %v490_v2 }
 0x303   :  { %v511_v61 = vadd.f32 %v3406_v10, %v510_v55  ;;  %v1348_v23 = vmul.f32 %v3448_v0, %v1347_v38  ;;  %v3574_v25 = vmul.f32 %v3185_v33, %v974_v21  ;;  %v1354_v33 = vand.u32 2147483647, %v3359_v41 }
 0x304   :  { %v487_v55 = vsel %vm3559_vm5, %v3397_v57, %v483_v60  ;;  %v519_v2 = vor.u32 1.1754944e-38, %v518_v22  ;;  %v1356_v21 = vand.u32 2147483648, %v3359_v41  ;;  %v1836_v30 = vand.u32 2147483647, %v3404_v52 }
 0x305   :  { %v515_v38 = vsel %vm3581_vm8, %v3406_v10, %v511_v61  ;;  %v1349_v57 = vadd.f32 %v3448_v0, %v1348_v23  ;;  %v3596_v60 = vsel %vm3563_vm6, %v491_v46, %v487_v55  ;;  %v1410_v10 = vand.u32 2147483647, %v3395_v44 }
 0x306   :  { %v3525_v18 = vpop.eup %2468  ;;  %v1412_v61 = vand.u32 2147483648, %v3395_v44  ;;  %v3602_v23 = vsel %vm517_vm11, %v519_v2, %v515_v38  ;;  %vm3610_vm10 = vcmp.eq.f32.partialorder %v1354_v33, 8.507059e+37  ;;  %v1838_v41 = vand.u32 2147483648, %v3404_v52 }
 0x307   :  { %v3474_v11 = vpop.xlane.xlu0 %1343  ;;  %v3534_v37 = vpop.eup %2470  ;;  %v1402_v35 = vmul.f32 %v3525_v18, %v3395_v44  ;;  %v1357_v13 = vor.u32 1.1754944e-38, %v1356_v21  ;;  %vm1832_vm15 = vweird.f32 %v3404_v52  ;;  %vm1406_vm2 = vweird.f32 %v3395_v44 }
 0x308   :  { %v3482_v56 = vpop.xlane.xlu2 %454  ;;  %v1828_v7 = vmul.f32 %v3534_v37, %v3404_v52  ;;  %vm3631_vm3 = vcmp.eq.f32.partialorder %v1410_v10, 8.507059e+37  ;;  %vm3639_vm4 = vcmp.eq.f32.partialorder %v1836_v30, 8.507059e+37  ;;  %v1839_v21 = vor.u32 1.1754944e-38, %v1838_v41 }
 0x309   :  { %2472 = vrcp.f32 %v3482_v56  ;;  %v1403_v50 = vsub.f32 1.0, %v1402_v35  ;;  %vm1407_vm5 = vweird.f32 %v3525_v18  ;;  %vm1833_vm6 = vweird.f32 %v3534_v37 }
 0x30a   :  { %2474 = vrcp.f32 %v3474_v11  ;;  %v1829_v15 = vsub.f32 1.0, %v1828_v7  ;;  %v532_v7 = vand.u32 2147483648, %v3482_v56  ;;  %vm3658_vm8 = vmor %vm1406_vm2, %vm1407_vm5  ;;  %vm526_vm9 = vweird.f32 %v3482_v56 }
 0x30b   :  { %v1404_v46 = vmul.f32 %v3525_v18, %v1403_v50  ;;  %vm3667_vm12 = vmor %vm1832_vm15, %vm1833_vm6  ;;  %v3722_v26 = vmul.f32 %v3191_v20, %v3596_v60  ;;  %v3728_v50 = vmul.f32 %v3197_v9, %v3602_v23 }
 0x30c   :  { %v1830_v55 = vmul.f32 %v3534_v37, %v1829_v15 }
 0x30d   :  { %v1405_v10 = vadd.f32 %v3525_v18, %v1404_v46  ;;  %v1454_v46 = vand.u32 2147483648, %v3474_v11 }
 0x30f   :  { %v3540_v16 = vpop.eup %2472  ;;  %v1455_v1 = vor.u32 1.1754944e-38, %v1454_v46 }
 0x310   :  { %v3546_v28 = vpop.eup %2474  ;;  %v522_v34 = vmul.f32 %v3540_v16, %v3482_v56  ;;  %vm527_vm7 = vweird.f32 %v3540_v16 }
 0x311   :  { %v1444_v43 = vmul.f32 %v3546_v28, %v3474_v11  ;;  %vm1449_vm11 = vweird.f32 %v3546_v28 }
 0x312   :  { %v3571_v54 = vpop.xlane.xlu1 %1783  ;;  %v523_v27 = vsub.f32 1.0, %v522_v34  ;;  %v1353_v34 = vsel %vm3606_vm14, %v3448_v0, %v1349_v57  ;;  %v1413_v0 = vor.u32 1.1754944e-38, %v1412_v61  ;;  %v530_v61 = vand.u32 2147483647, %v3482_v56 }
 0x313   :  { %2476 = vrcp.f32 %v3571_v54  ;;  %v1445_v4 = vsub.f32 1.0, %v1444_v43  ;;  %v1358_v15 = vsel %vm3610_vm10, %v1357_v13, %v1353_v34  ;;  %vm1448_vm14 = vweird.f32 %v3474_v11  ;;  %vm3688_vm10 = vmor %vm526_vm9, %vm527_vm7 }
 0x314   :  { %v524_v43 = vmul.f32 %v3540_v16, %v523_v27  ;;  %v1831_v27 = vadd.f32 %v3534_v37, %v1830_v55  ;;  %v1457_v41 = vmul.f32 %v3204_v47, %v1358_v15  ;;  %v1452_v47 = vand.u32 2147483647, %v3474_v11  ;;  %vm3702_vm2 = vmor %vm1448_vm14, %vm1449_vm11 }
 0x315   :  { %v1446_v57 = vmul.f32 %v3546_v28, %v1445_v4  ;;  %v1409_v15 = vsel %vm3658_vm8, %v3525_v18, %v1405_v10  ;;  %vm3692_vm15 = vcmp.eq.f32.partialorder %v530_v61, 8.507059e+37 }
 0x316   :  { %v525_v4 = vadd.f32 %v3540_v16, %v524_v43  ;;  %v1835_v52 = vsel %vm3667_vm12, %v3534_v37, %v1831_v27  ;;  %v533_v27 = vor.u32 1.1754944e-38, %v532_v7  ;;  %v1892_v7 = vand.u32 2147483647, %v3571_v54 }
 0x317   :  { %v1447_v55 = vadd.f32 %v3546_v28, %v1446_v57  ;;  %vm1453_vm5 = vcmp.eq.f32.partialorder %v1452_v47, 8.507059e+37  ;;  %v3731_v2 = vadd.f32 %v1457_v41, %v3552_v53 }
 0x318   :  { %v3616_v22 = vpop.xlane.xlu2 %900  ;;  %v529_v37 = vsel %vm3688_vm10, %v3540_v16, %v525_v4  ;;  %v1840_v16 = vsel %vm3639_vm4, %v1839_v21, %v1835_v52  ;;  %v1414_v4 = vsel %vm3631_vm3, %v1413_v0, %v1409_v15  ;;  %vm1888_vm3 = vweird.f32 %v3571_v54 }
 0x319   :  { %2478 = vrcp.f32 %v3616_v22  ;;  %v3629_v33 = vpop.eup %2476  ;;  %v1451_v13 = vsel %vm3702_vm2, %v3546_v28, %v1447_v55  ;;  %v534_v28 = vsel %vm3692_vm15, %v533_v27, %v529_v37  ;;  %v3737_v20 = vmul.f32 %v3212_v39, %v1840_v16 }
 0x31a   :  { %v3627_v38 = vpop.xlane.xlu1 %891  ;;  %v1884_v35 = vmul.f32 %v3629_v33, %v3571_v54  ;;  %v1456_v0 = vsel %vm1453_vm5, %v1455_v1, %v1451_v13  ;;  %v1461_v60 = vmul.f32 %v3210_v62, %v1414_v4  ;;  %v581_v9 = vmul.f32 %v3220_v5, %v534_v28 }
 0x31b   :  { %2480 = vrcp.f32 %v3627_v38  ;;  %vm3743_vm4 = vcmp.eq.f32.partialorder %v1892_v7, 8.507059e+37  ;;  %v3754_v62 = vmul.f32 %v3218_v45, %v1456_v0  ;;  %vm994_vm6 = vweird.f32 %v3616_v22 }
 0x31c   :  { %v1885_v10 = vsub.f32 1.0, %v1884_v35  ;;  %v1894_v35 = vand.u32 2147483648, %v3571_v54  ;;  %vm1889_vm7 = vweird.f32 %v3629_v33  ;;  %v998_v52 = vand.u32 2147483647, %v3616_v22 }
 0x31d   :  { %v1000_v37 = vand.u32 2147483648, %v3616_v22  ;;  %v956_v27 = vand.u32 2147483647, %v3627_v38  ;;  %v1029_v18 = vadd.f32 %v3574_v25, %v581_v9  ;;  %vm3774_vm11 = vmor %vm1888_vm3, %vm1889_vm7  ;;  %vm952_vm12 = vweird.f32 %v3627_v38 }
 0x31e   :  { %v1886_v21 = vmul.f32 %v3629_v33, %v1885_v10  ;;  %v1895_v1 = vor.u32 1.1754944e-38, %v1894_v35  ;;  %v958_v10 = vand.u32 2147483648, %v3627_v38  ;;  %vm3791_vm10 = vcmp.eq.f32.partialorder %v998_v52, 8.507059e+37 }
 0x31f   :  { %v3653_v30 = vpop.eup %2478  ;;  %v1001_v28 = vor.u32 1.1754944e-38, %v1000_v37  ;;  %vm3802_vm15 = vcmp.eq.f32.partialorder %v956_v27, 8.507059e+37 }
 0x320   :  { %v990_v44 = vmul.f32 %v3653_v30, %v3616_v22  ;;  %v3676_v43 = vpop.xlane.xlu2 %903  ;;  %v1887_v5 = vadd.f32 %v3629_v33, %v1886_v21  ;;  %vm995_vm8 = vweird.f32 %v3653_v30  ;;  %v959_v21 = vor.u32 1.1754944e-38, %v958_v10 }
 0x321   :  { %v3678_v57 = vpop.eup %2480  ;;  %2482 = vrcp.f32 %v3676_v43  ;;  %vm3787_vm14 = vmor %vm994_vm6, %vm995_vm8  ;;  %v1014_v7 = vand.u32 2147483648, %v3676_v43  ;;  %vm1008_vm5 = vweird.f32 %v3676_v43 }
 0x322   :  { %v948_v61 = vmul.f32 %v3678_v57, %v3627_v38  ;;  %v3708_v34 = vpop.xlane.xlu1 %463  ;;  %v991_v56 = vsub.f32 1.0, %v990_v44  ;;  %vm953_vm9 = vweird.f32 %v3678_v57  ;;  %v1891_v25 = vsel %vm3774_vm11, %v3629_v33, %v1887_v5 }
 0x323   :  { %2484 = vrcp.f32 %v3708_v34  ;;  %v1012_v38 = vand.u32 2147483647, %v3676_v43  ;;  %vm3807_vm2 = vmor %vm952_vm12, %vm953_vm9  ;;  %v574_v23 = vand.u32 2147483648, %v3708_v34  ;;  %vm568_vm7 = vweird.f32 %v3708_v34 }
 0x324   :  { %v949_v55 = vsub.f32 1.0, %v948_v61  ;;  %v992_v47 = vmul.f32 %v3653_v30, %v991_v56 }
 0x325   :  { %vm3827_vm3 = vcmp.eq.f32.partialorder %v1012_v38, 8.507059e+37  ;;  %v575_v4 = vor.u32 1.1754944e-38, %v574_v23 }
 0x326   :  { %v950_v44 = vmul.f32 %v3678_v57, %v949_v55  ;;  %v993_v45 = vadd.f32 %v3653_v30, %v992_v47 }
 0x327   :  { %v3734_v46 = vpop.eup %2482 }
 0x328   :  { %v1004_v53 = vmul.f32 %v3734_v46, %v3676_v43  ;;  %v3749_v41 = vpop.xlane.xlu2 %1325  ;;  %v951_v16 = vadd.f32 %v3678_v57, %v950_v44  ;;  %v997_v33 = vsel %vm3787_vm14, %v3653_v30, %v993_v45  ;;  %v3816_v30 = vadd.f32 %v1461_v60, %v1029_v18 }
 0x329   :  { %v3751_v39 = vpop.eup %2484  ;;  %2486 = vrcp.f32 %v3749_v41  ;;  %v1896_v44 = vsel %vm3743_vm4, %v1895_v1, %v1891_v25  ;;  %v1002_v52 = vsel %vm3791_vm10, %v1001_v28, %v997_v33  ;;  %v1015_v60 = vor.u32 1.1754944e-38, %v1014_v7 }
 0x32a   :  { %v564_v15 = vmul.f32 %v3751_v39, %v3708_v34  ;;  %v3764_v11 = vpop.xlane.xlu1 %888  ;;  %v1005_v61 = vsub.f32 1.0, %v1004_v53  ;;  %v955_v5 = vsel %vm3807_vm2, %v3678_v57, %v951_v16  ;;  %v572_v45 = vand.u32 2147483647, %v3708_v34 }
 0x32b   :  { %2488 = vrcp.f32 %v3764_v11  ;;  %vm1009_vm4 = vweird.f32 %v3734_v46  ;;  %vm569_vm6 = vweird.f32 %v3751_v39  ;;  %v960_v18 = vsel %vm3802_vm15, %v959_v21, %v955_v5 }
 0x32c   :  { %v565_v13 = vsub.f32 1.0, %v564_v15  ;;  %v1006_v47 = vmul.f32 %v3734_v46, %v1005_v61  ;;  %v1023_v56 = vmul.f32 %v3234_v49, %v1002_v52  ;;  %v1368_v16 = vand.u32 2147483647, %v3749_v41  ;;  %vm3852_vm8 = vmor %vm568_vm7, %vm569_vm6 }
 0x32d   :  { %vm3856_vm11 = vcmp.eq.f32.partialorder %v572_v45, 8.507059e+37  ;;  %vm1364_vm12 = vweird.f32 %v3749_v41  ;;  %v1020_v49 = vmul.f32 %v3240_v59, %v960_v18  ;;  %vm3868_vm9 = vmor %vm1008_vm5, %vm1009_vm4  ;;  %v1370_v28 = vand.u32 2147483648, %v3749_v41 }
 0x32e   :  { %v566_v55 = vmul.f32 %v3751_v39, %v565_v13  ;;  %v1007_v10 = vadd.f32 %v3734_v46, %v1006_v47  ;;  %v3847_v13 = vmul.f32 %v3229_v14, %v1896_v44  ;;  %v942_v43 = vand.u32 2147483647, %v3764_v11 }
 0x32f   :  { %v3797_v35 = vpop.eup %2486  ;;  %v3887_v21 = vadd.f32 %v1023_v56, %v3528_v29  ;;  %vm3889_vm14 = vcmp.eq.f32.partialorder %v1368_v16, 8.507059e+37  ;;  %vm938_vm15 = vweird.f32 %v3764_v11  ;;  %v3911_v23 = vadd.f32 %v1020_v49, %v3728_v50 }
 0x330   :  { %v1360_v9 = vmul.f32 %v3797_v35, %v3749_v41  ;;  %v3814_v53 = vpop.xlane.xlu2 %897  ;;  %v567_v57 = vadd.f32 %v3751_v39, %v566_v55  ;;  %v1011_v59 = vsel %vm3868_vm9, %v3734_v46, %v1007_v10  ;;  %v944_v46 = vand.u32 2147483648, %v3764_v11 }
 0x331   :  { %2490 = vrcp.f32 %v3814_v53  ;;  %v3835_v37 = vpop.eup %2488  ;;  %v986_v29 = vand.u32 2147483648, %v3814_v53  ;;  %v1016_v52 = vsel %vm3827_vm3, %v1015_v60, %v1011_v59  ;;  %vm1365_vm2 = vweird.f32 %v3797_v35 }
 0x332   :  { %v3833_v1 = vpop.xlane.xlu1 %1337  ;;  %v1361_v27 = vsub.f32 1.0, %v1360_v9  ;;  %v934_v61 = vmul.f32 %v3835_v37, %v3764_v11  ;;  %v571_v7 = vsel %vm3852_vm8, %v3751_v39, %v567_v57  ;;  %vm939_vm10 = vweird.f32 %v3835_v37  ;;  %vm3932_vm3 = vmor %vm1364_vm12, %vm1365_vm2 }
 0x333   :  { %2492 = vrcp.f32 %v3833_v1  ;;  %v576_v9 = vsel %vm3856_vm11, %v575_v4, %v571_v7  ;;  %v1371_v57 = vor.u32 1.1754944e-38, %v1370_v28  ;;  %vm3915_vm5 = vmor %vm938_vm15, %vm939_vm10  ;;  %vm3919_vm4 = vcmp.eq.f32.partialorder %v942_v43, 8.507059e+37 }
 0x334   :  { %v935_v38 = vsub.f32 1.0, %v934_v61  ;;  %v1362_v33 = vmul.f32 %v3797_v35, %v1361_v27  ;;  %v584_v60 = vmul.f32 %v3250_v48, %v576_v9  ;;  %v945_v50 = vor.u32 1.1754944e-38, %v944_v46 }
 0x335   :  { %v1024_v61 = vmul.f32 %v3245_v63, %v1016_v52  ;;  %vm980_vm6 = vweird.f32 %v3814_v53  ;;  %v984_v48 = vand.u32 2147483647, %v3814_v53  ;;  %v3938_v16 = vor.u32 1.1754944e-38, %v986_v29 }
 0x336   :  { %v936_v22 = vmul.f32 %v3835_v37, %v935_v38  ;;  %v1363_v45 = vadd.f32 %v3797_v35, %v1362_v33  ;;  %v1424_v54 = vand.u32 2147483647, %v3833_v1  ;;  %v1426_v49 = vand.u32 2147483648, %v3833_v1 }
 0x337   :  { %v3861_v14 = vpop.eup %2490  ;;  %v1032_v28 = vadd.f32 %v1024_v61, %v584_v60 }
 0x338   :  { %v976_v55 = vmul.f32 %v3861_v14, %v3814_v53  ;;  %v3884_v0 = vpop.xlane.xlu2 %1328  ;;  %v937_v44 = vadd.f32 %v3835_v37, %v936_v22  ;;  %vm981_vm7 = vweird.f32 %v3861_v14  ;;  %v4348_v53 = vand.u32 2147483647, %v3319_v17 }
 0x339   :  { %2494 = vrcp.f32 %v3884_v0  ;;  %v3896_v47 = vpop.eup %2492  ;;  %v1382_v63 = vand.u32 2147483647, %v3884_v0  ;;  %v1384_v41 = vand.u32 2147483648, %v3884_v0  ;;  %vm1378_vm8 = vweird.f32 %v3884_v0 }
 0x33a   :  { %v3903_v5 = vpop.xlane.xlu1 %1331  ;;  %v977_v15 = vsub.f32 1.0, %v976_v55  ;;  %v941_v18 = vsel %vm3915_vm5, %v3835_v37, %v937_v44  ;;  %v1416_v10 = vmul.f32 %v3896_v47, %v3833_v1  ;;  %v1367_v37 = vsel %vm3932_vm3, %v3797_v35, %v1363_v45 }
 0x33b   :  { %2496 = vrcp.f32 %v3903_v5  ;;  %v946_v4 = vsel %vm3919_vm4, %v945_v50, %v941_v18  ;;  %v3957_v59 = vsel %vm3889_vm14, %v1371_v57, %v1367_v37  ;;  %v1396_v55 = vand.u32 2147483647, %v3903_v5  ;;  %vm3982_vm14 = vmor %vm980_vm6, %vm981_vm7 }
 0x33c   :  { %v978_v38 = vmul.f32 %v3861_v14, %v977_v15  ;;  %v1417_v35 = vsub.f32 1.0, %v1416_v10  ;;  %v1019_v44 = vmul.f32 %v3255_v8, %v946_v4  ;;  %vm3967_vm11 = vcmp.eq.f32.partialorder %v1382_v63, 8.507059e+37 }
 0x33d   :  { %v1385_v39 = vor.u32 1.1754944e-38, %v1384_v41  ;;  %vm1392_vm9 = vweird.f32 %v3903_v5  ;;  %v1398_v27 = vand.u32 2147483648, %v3903_v5  ;;  %vm3986_vm15 = vcmp.eq.f32.partialorder %v1396_v55, 8.507059e+37 }
 0x33e   :  { %v3972_v52 = vadd.f32 %v3861_v14, %v978_v38  ;;  %v1418_v11 = vmul.f32 %v3896_v47, %v1417_v35  ;;  %v1027_v10 = vadd.f32 %v1019_v44, %v3516_v31  ;;  %v4002_v37 = vadd.f32 %v3754_v62, %v1032_v28 }
 0x33f   :  { %v2495_v25 = vpop.eup %2494  ;;  %v1399_v62 = vor.u32 1.1754944e-38, %v1398_v27  ;;  %v1026_v8 = vadd.f32 %v3537_v40, %v3722_v26  ;;  %v4358_v26 = vld [vmem:[#allocation18_spill] sm:$0xff] }
 0x340   :  { %v1374_v34 = vmul.f32 %v2495_v25, %v3884_v0  ;;  %v3951_v7 = vpop.xlane.xlu2 %1774  ;;  %vm1379_vm12 = vweird.f32 %v2495_v25  ;;  %v983_v63 = vsel %vm3982_vm14, %v3861_v14, %v3972_v52  ;;  %v4013_v38 = vadd.f32 %v3896_v47, %v1418_v11 }
 0x341   :  { %v2497_v33 = vpop.eup %2496  ;;  %2498 = vrcp.f32 %v3951_v7  ;;  %vm3995_vm2 = vmor %vm1378_vm8, %vm1379_vm12  ;;  %v1850_v56 = vand.u32 2147483647, %v3951_v7  ;;  %vm1846_vm4 = vweird.f32 %v3951_v7 }
 0x342   :  { %v1375_v22 = vsub.f32 1.0, %v1374_v34  ;;  %v1388_v43 = vmul.f32 %v2497_v33, %v3903_v5  ;;  %v3961_v46 = vpop.xlane.xlu0 %1768  ;;  %v3963_v9 = vpop.xlane.xlu1 %1762  ;;  %vm1393_vm10 = vweird.f32 %v2497_v33  ;;  %v1852_v34 = vand.u32 2147483648, %v3951_v7 }
 0x343   :  { %2500 = vrcp.f32 %v3961_v46  ;;  %vm1394_vm5 = vmor %vm1392_vm9, %vm1393_vm10  ;;  %vm1818_vm3 = vweird.f32 %v3961_v46  ;;  %vm4026_vm6 = vcmp.eq.f32.partialorder %v1850_v56, 8.507059e+37  ;;  %v1822_v44 = vand.u32 2147483647, %v3961_v46 }
 0x344   :  { %v1376_v45 = vmul.f32 %v2495_v25, %v1375_v22  ;;  %v1389_v57 = vsub.f32 1.0, %v1388_v43  ;;  %2502 = vrcp.f32 %v3963_v9  ;;  %vm1790_vm8 = vweird.f32 %v3963_v9 }
 0x346   :  { %v1377_v15 = vadd.f32 %v2495_v25, %v1376_v45  ;;  %v1390_v60 = vmul.f32 %v2497_v33, %v1389_v57  ;;  %v1824_v45 = vand.u32 2147483648, %v3961_v46  ;;  %v1794_v57 = vand.u32 2147483647, %v3963_v9 }
 0x347   :  { %v3990_v50 = vpop.eup %2498 }
 0x348   :  { %v1381_v31 = vsel %vm3995_vm2, %v2495_v25, %v1377_v15  ;;  %v1391_v0 = vadd.f32 %v2497_v33, %v1390_v60  ;;  %v1842_v41 = vmul.f32 %v3990_v50, %v3951_v7  ;;  %v2104_v4 = vpop.permute.xlu2 %2103  ;;  %vm1847_vm7 = vweird.f32 %v3990_v50 }
 0x349   :  { %2124 = vmatpush.msra.mxu0 %v2104_v4  ;;  %v1386_v25 = vsel %vm3967_vm11, %v1385_v39, %v1381_v31  ;;  %v2501_v43 = vpop.eup %2500  ;;  %v1853_v60 = vor.u32 1.1754944e-38, %v1852_v34  ;;  %vm4045_vm11 = vcmp.eq.f32.partialorder %v1822_v44, 8.507059e+37  ;;  %vm4053_vm12 = vmor %vm1846_vm4, %vm1847_vm7  ;;  %vm4057_vm10 = vcmp.eq.f32.partialorder %v1794_v57, 8.507059e+37 }
 0x34a   :  { %v1395_v28 = vsel %vm1394_vm5, %v2497_v33, %v1391_v0  ;;  %v1843_v35 = vsub.f32 1.0, %v1842_v41  ;;  %v4022_v22 = vpop.xlane.xlu0 %1340  ;;  %v1814_v39 = vmul.f32 %v2501_v43, %v3961_v46  ;;  %v4037_v11 = vpop.xlane.xlu1 %1780  ;;  %v1459_v15 = vmul.f32 %v3276_v51, %v1386_v25 }
 0x34b   :  { %v1400_v5 = vsel %vm3986_vm15, %v1399_v62, %v1395_v28  ;;  %2504 = vrcp.f32 %v4022_v22  ;;  %v2503_v27 = vpop.eup %2502  ;;  %v1825_v0 = vor.u32 1.1754944e-38, %v1824_v45  ;;  %v1796_v41 = vand.u32 2147483648, %v3963_v9 }
 0x34c   :  { %v1460_v33 = vmul.f32 %v3278_v32, %v1400_v5  ;;  %v1844_v29 = vmul.f32 %v3990_v50, %v1843_v35  ;;  %v1815_v61 = vsub.f32 1.0, %v1814_v39  ;;  %v1786_v56 = vmul.f32 %v2503_v27, %v3963_v9 }
 0x34d   :  { %2506 = vrcp.f32 %v4037_v11  ;;  %vm1819_vm9 = vweird.f32 %v2501_v43  ;;  %v1467_v25 = vadd.f32 %v1459_v15, %v1027_v10  ;;  %vm1434_vm15 = vweird.f32 %v4022_v22 }
 0x34e   :  { %v1468_v18 = vadd.f32 %v1460_v33, %v3911_v23  ;;  %v1845_v32 = vadd.f32 %v3990_v50, %v1844_v29  ;;  %v1816_v23 = vmul.f32 %v2501_v43, %v1815_v61  ;;  %v1787_v4 = vsub.f32 1.0, %v1786_v56  ;;  %vm1820_vm5 = vmor %vm1818_vm3, %vm1819_vm9 }
 0x34f   :  { %vm1791_vm2 = vweird.f32 %v2503_v27  ;;  %v1797_v33 = vor.u32 1.1754944e-38, %v1796_v41  ;;  %v1438_v10 = vand.u32 2147483647, %v4022_v22  ;;  %v1440_v29 = vand.u32 2147483648, %v4022_v22 }
 0x350   :  { %v1849_v28 = vsel %vm4053_vm12, %v3990_v50, %v1845_v32  ;;  %v1908_v7 = vadd.f32 %v3737_v20, %v1468_v18  ;;  %v1817_v35 = vadd.f32 %v2501_v43, %v1816_v23  ;;  %v1788_v5 = vmul.f32 %v2503_v27, %v1787_v4  ;;  %vm1792_vm3 = vmor %vm1790_vm8, %vm1791_vm2 }
 0x351   :  { %v2505_v34 = vpop.eup %2504  ;;  %v1854_v20 = vsel %vm4026_vm6, %v1853_v60, %v1849_v28  ;;  %vm1421_vm4 = vweird.f32 %v3896_v47  ;;  %v1878_v18 = vand.u32 2147483647, %v4037_v11  ;;  %vm4087_vm6 = vcmp.eq.f32.partialorder %v984_v48, 8.507059e+37  ;;  %v2131_v48 = vld [vmem:[#allocation7 + $0x10] sm:$0xff] }
 0x352   :  { %v1430_v44 = vmul.f32 %v2505_v34, %v4022_v22  ;;  %v4067_v45 = vpop.xlane.xlu0 %1765  ;;  %v1821_v50 = vsel %vm1820_vm5, %v2501_v43, %v1817_v35  ;;  %v1789_v39 = vadd.f32 %v2503_v27, %v1788_v5  ;;  %vm1435_vm7 = vweird.f32 %v2505_v34 }
 0x353   :  { %2508 = vrcp.f32 %v4067_v45  ;;  %v2507_v15 = vpop.eup %2506  ;;  %v1826_v46 = vsel %vm4045_vm11, %v1825_v0, %v1821_v50  ;;  %v1916_v32 = vmul.f32 0.25, %v1908_v7  ;;  %vm1420_vm11 = vweird.f32 %v3833_v1 }
 0x354   :  { %v1431_v57 = vsub.f32 1.0, %v1430_v44  ;;  %v1899_v55 = vmul.f32 %v3293_v42, %v1826_v46  ;;  %v1793_v60 = vsel %vm1792_vm3, %v2503_v27, %v1789_v39  ;;  %v1870_v61 = vmul.f32 %v2507_v15, %v4037_v11 }
 0x355   :  { %v1901_v9 = vmul.f32 %v3286_v3, %v1854_v20  ;;  %v1798_v31 = vsel %vm4057_vm10, %v1797_v33, %v1793_v60  ;;  %vm4095_vm8 = vcmp.eq.f32.partialorder %v1438_v10, 8.507059e+37  ;;  %v1880_v42 = vand.u32 2147483648, %v4037_v11  ;;  %2331 = vmatmul.msk.f32.vlgmr.msrb.gmra.mxu0 %vm161_vm1, %v1916_v32  ;;  %2213 = vst.msk [vmem:[#allocation9 + $0x18] sm:$0xff] %vm161_vm1, %v1916_v32  ;;  %vm1436_vm10 = vmor %vm1434_vm15, %vm1435_vm7 }
 0x356   :  { %v1432_v43 = vmul.f32 %v2505_v34, %v1431_v57  ;;  %vm4104_vm12 = vcmp.eq.f32.partialorder %v4348_v53, 8.507059e+37  ;;  %v1441_v27 = vor.u32 1.1754944e-38, %v1440_v29  ;;  %v1871_v41 = vsub.f32 1.0, %v1870_v61  ;;  %vm4154_vm7 = vmor %vm1420_vm11, %vm1421_vm4 }
 0x357   :  { %vm1874_vm9 = vweird.f32 %v4037_v11  ;;  %v1897_v23 = vmul.f32 %v3288_v6, %v1798_v31  ;;  %vm4113_vm2 = vcmp.eq.f32.partialorder %v1878_v18, 8.507059e+37  ;;  %v1907_v17 = vadd.f32 %v1899_v55, %v1467_v25  ;;  %v4356_v11 = vld [vmem:[#allocation19_spill] sm:$0xff]  ;;  %v2132_v55 = vld [vmem:[#allocation7 + $0x18] sm:$0xff] }
 0x358   :  { %v1433_v3 = vadd.f32 %v2505_v34, %v1432_v43  ;;  %v1912_v62 = vadd.f32 %v3847_v13, %v4002_v37  ;;  %v1872_v7 = vmul.f32 %v2507_v15, %v1871_v41  ;;  %vm1875_vm5 = vweird.f32 %v2507_v15  ;;  %v4359_v43 = vld [vmem:[#allocation20_spill] sm:$0xff]  ;;  %v4360_v31 = vld [vmem:[#allocation15_spill] sm:$0xff]  ;;  %v4361_v41 = vld [vmem:[#allocation17_spill] sm:$0xff] }
 0x359   :  { %v2509_v51 = vpop.eup %2508  ;;  %v1881_v22 = vor.u32 1.1754944e-38, %v1880_v42  ;;  %v1909_v44 = vadd.f32 %v1901_v9, %v3816_v30  ;;  %v1808_v13 = vand.u32 2147483647, %v4067_v45  ;;  %vm1876_vm15 = vmor %vm1874_vm9, %vm1875_vm5  ;;  %v1810_v37 = vand.u32 2147483648, %v4067_v45 }
 0x35a   :  { %v1437_v28 = vsel %vm1436_vm10, %v2505_v34, %v1433_v3  ;;  %v1800_v35 = vmul.f32 %v2509_v51, %v4067_v45  ;;  %v4120_v5 = vpop.xlane.xlu0 %1777  ;;  %v1873_v33 = vadd.f32 %v2507_v15, %v1872_v7  ;;  %v1905_v34 = vadd.f32 %v1897_v23, %v3731_v2 }
 0x35b   :  { %v1442_v6 = vsel %vm4095_vm8, %v1441_v27, %v1437_v28  ;;  %2510 = vrcp.f32 %v4120_v5  ;;  %v1915_v29 = vmul.f32 0.25, %v1907_v17  ;;  %v1920_v20 = vmul.f32 0.25, %v1912_v62  ;;  %v2130_v27 = vld [vmem:[#allocation7 + $0x8] sm:$0xff] }
 0x35c   :  { %v1463_v25 = vmul.f32 %v3302_v58, %v1442_v6  ;;  %v1801_v10 = vsub.f32 1.0, %v1800_v35  ;;  %v1877_v39 = vsel %vm1876_vm15, %v2507_v15, %v1873_v33  ;;  %vm1805_vm3 = vweird.f32 %v2509_v51  ;;  %v4353_v58 = vld [vmem:[#allocation16_spill] sm:$0xff]  ;;  %v4362_v35 = vld [vmem:[#allocation21_spill] sm:$0xff] }
 0x35d   :  { %v1458_v30 = vmul.f32 %v4353_v58, %v3957_v59  ;;  %v1882_v46 = vsel %vm4113_vm2, %v1881_v22, %v1877_v39  ;;  %v1913_v18 = vmul.f32 0.25, %v1905_v34  ;;  %2330 = vmatmul.msk.f32.vlgmr.msra.gmra.mxu3 %vm161_vm1, %v1915_v29  ;;  %2212 = vst.msk [vmem:[#allocation9 + $0x10] sm:$0xff] %vm161_vm1, %v1915_v29  ;;  %2335 = vmatmul.msk.f32.vlgmr.msra.gmra.mxu0 %vm161_vm1, %v1920_v20  ;;  %v4140_v2 = vmul.f32 0.25, %v1909_v44  ;;  %v2383_v58 = vld [vmem:[%s4236_s4] ss:$0 sm:$0xff]  ;;  %s2654_s4 = smov [#allocation8]  }
 0x35e   :  { %v1471_v50 = vadd.f32 %v1463_v25, %v3887_v21  ;;  %v1802_v57 = vmul.f32 %v2509_v51, %v1801_v10  ;;  %v988_v21 = vsel %vm4087_vm6, %v3938_v16, %v983_v63  ;;  %v1903_v15 = vmul.f32 %v4356_v11, %v1882_v46  ;;  %2217 = vst.msk [vmem:[#allocation9 + $0x38] sm:$0xff] %vm161_vm1, %v1920_v20  ;;  %v2129_v10 = vld [vmem:[#allocation7] sm:$0xff]  ;;  %s2222_s6 = sshll.u32 %s2654_s4, 4  ;;  %s2223_s6 = int_to_ptr.vmem [resolvable:$true] %s2222_s6 }
 0x35f   :  { %vm1804_vm8 = vweird.f32 %v4067_v45  ;;  %v4357_v16 = vsel %vm3498_vm13, %v3340_v19, %v3388_v36  ;;  %v1423_v63 = vsel %vm4154_vm7, %v3896_v47, %v4013_v38  ;;  %v1811_v45 = vor.u32 1.1754944e-38, %v1810_v37  ;;  %2328 = vmatmul.msk.f32.vlgmr.msrb.gmra.mxu1 %vm161_vm1, %v1913_v18  ;;  %2210 = vst.msk [vmem:[#allocation9] sm:$0xff] %vm161_vm1, %v1913_v18 }
 0x360   :  { %v1803_v32 = vadd.f32 %v2509_v51, %v1802_v57  ;;  %v548_v52 = vsel %vm4104_vm12, %v3513_v12, %v4357_v16  ;;  %vm1806_vm14 = vmor %vm1804_vm8, %vm1805_vm3  ;;  %vm1809_vm13 = vcmp.eq.f32.partialorder %v1808_v13, 8.507059e+37  ;;  %v1911_v12 = vadd.f32 %v1903_v15, %v1471_v50  ;;  %2214 = vst.msk [vmem:[#allocation9 + $0x20] sm:$0xff] %vm161_vm1, %v4140_v2 }
 0x361   :  { %v2511_v14 = vpop.eup %2510  ;;  %v1022_v40 = vmul.f32 %v4358_v26, %v988_v21  ;;  %vm1425_vm4 = vcmp.eq.f32.partialorder %v1424_v54, 8.507059e+37  ;;  %v1427_v47 = vor.u32 1.1754944e-38, %v1426_v49  ;;  %v1466_v60 = vadd.f32 %v1458_v30, %v1026_v8 }
 0x362   :  { %v1807_v19 = vsel %vm1806_vm14, %v2509_v51, %v1803_v32  ;;  %v1856_v36 = vmul.f32 %v2511_v14, %v4120_v5  ;;  %v2078_v24 = vpop.permute.xlu1 %2077  ;;  %v1919_v9 = vmul.f32 0.25, %v1911_v12  ;;  %v582_v0 = vmul.f32 %v4360_v31, %v548_v52 }
 0x363   :  { %v1812_v38 = vsel %vm1809_vm13, %v1811_v45, %v1807_v19  ;;  %2098 = vmatpush.msrb.mxu3 %v2078_v24  ;;  %v1428_v42 = vsel %vm1425_vm4, %v1427_v47, %v1423_v63  ;;  %v1866_v53 = vand.u32 2147483648, %v4120_v5  ;;  %vm1861_vm6 = vweird.f32 %v2511_v14 }
 0x364   :  { %v1898_v61 = vmul.f32 %v4359_v43, %v1812_v38  ;;  %v1857_v56 = vsub.f32 1.0, %v1856_v36  ;;  %v1864_v1 = vand.u32 2147483647, %v4120_v5  ;;  %2216 = vst.msk [vmem:[#allocation9 + $0x30] sm:$0xff] %vm161_vm1, %v1919_v9  ;;  %v1030_v49 = vadd.f32 %v1022_v40, %v582_v0 }
 0x365   :  { %2345 = vmatpush.msra.mxu3 %v2132_v55  ;;  %v1462_v51 = vmul.f32 %v4361_v41, %v1428_v42  ;;  %vm1860_vm11 = vweird.f32 %v4120_v5  ;;  %v1867_v17 = vor.u32 1.1754944e-38, %v1866_v53 }
 0x366   :  { %v1858_v3 = vmul.f32 %v2511_v14, %v1857_v56  ;;  %v1906_v54 = vadd.f32 %v1898_v61, %v1466_v60  ;;  %2334 = vmatmul.msk.f32.vlgmr.msrb.gmra.mxu3 %vm161_vm1, %v1919_v9  ;;  %vm1862_vm12 = vmor %vm1860_vm11, %vm1861_vm6  ;;  %vm1865_vm9 = vcmp.eq.f32.partialorder %v1864_v1, 8.507059e+37 }
 0x367   :  { %2347 = vmatpush.msra.mxu3 %v2131_v48  ;;  %v1470_v7 = vadd.f32 %v1462_v51, %v1030_v49 }
 0x368   :  { %v1859_v23 = vadd.f32 %v2511_v14, %v1858_v3  ;;  %v1914_v4 = vmul.f32 0.25, %v1906_v54 }
 0x369   :  { %2349 = vmatpush.msra.mxu3 %v2130_v27 }
 0x36a   :  { %v1863_v62 = vsel %vm1862_vm12, %v2511_v14, %v1859_v23  ;;  %2329 = vmatmul.msk.f32.vlgmr.msrb.gmra.mxu2 %vm161_vm1, %v1914_v4  ;;  %2211 = vst.msk [vmem:[#allocation9 + $0x8] sm:$0xff] %vm161_vm1, %v1914_v4 }
 0x36b   :  { %v1868_v28 = vsel %vm1865_vm9, %v1867_v17, %v1863_v62  ;;  %2351 = vmatpush.msra.mxu3 %v2129_v10 }
 0x36c   :  { %v1902_v6 = vmul.f32 %v4362_v35, %v1868_v28 }
 0x36d   :  { %v2379_v22 = vpop.permute.xlu0 %2378 }
 0x36e   :  { %v2381_v44 = vunpack.i.h.bf16 %v2379_v22  ;;  %v2380_v25 = vunpack.i.l.bf16 %v2379_v22  ;;  %v1910_v33 = vadd.f32 %v1902_v6, %v1470_v7 }
 0x370   :  { %2046 = vmatpush.msra.mxu1 %v2380_v25  ;;  %2072 = vmatpush.msra.mxu2 %v2381_v44  ;;  %v1918_v5 = vmul.f32 0.25, %v1910_v33 }
 0x371   :  { %2332 = vmatmul.msk.f32.vlgmr.msra.gmra.mxu1 %vm161_vm1, %v4140_v2 }
 0x372   :  { %2344 = vmatpush.msrb.mxu2 %v2132_v55  ;;  %2215 = vst.msk [vmem:[#allocation9 + $0x28] sm:$0xff] %vm161_vm1, %v1918_v5  ;;  %2173 = vmatpush.msrb.mxu1 %v2132_v55 }
 0x373   :  { %2333 = vmatmul.msk.f32.vlgmr.msra.gmra.mxu2 %vm161_vm1, %v1918_v5  ;;  %2243 = dma.vmem_to_hbm [thread:$0]  %s2236_s21, 1024, %s2238_s24, [#allocation10], %s2641_s29, %s2641_s29, %s2642_s30  }
 0x374   :  { %2346 = vmatpush.msrb.mxu2 %v2131_v48  ;;  %2174 = vmatpush.msrb.mxu1 %v2131_v48 }
 0x376   :  { %2348 = vmatpush.msrb.mxu2 %v2130_v27  ;;  %2175 = vmatpush.msrb.mxu1 %v2130_v27 }
 0x378   :  { %2350 = vmatpush.msrb.mxu2 %v2129_v10  ;;  %2176 = vmatpush.msrb.mxu1 %v2129_v10 }
 0x3d2   :  { %v2022_v13 = vpop.f32.mrf.mxu0 }
 0x3d3   :  { %2339 = vmatmul.msk.f32.vlgmr.msrb.gmra.mxu2 %vm87_vm0, %v2022_v13 }
 0x3da   :  { %v2126_v39 = vpop.f32.mrf.mxu0 }
 0x3dc   :  { %v1944_v37 = vpop.f32.mrf.mxu1 }
 0x3dd   :  { %2336 = vmatmul.msk.f32.vlgmr.msrb.gmra.mxu1 %vm87_vm0, %v1944_v37 }
 0x3e0   :  { %v1996_v34 = vpop.f32.mrf.mxu3 }
 0x3e9   :  { %v2100_v29 = vpop.f32.mrf.mxu3 }
 0x3ea   :  { %2342 = vmatmul.msk.f32.vlgmr.msra.gmra.mxu3 %vm87_vm0, %v2100_v29 }
 0x3ed   :  { %v1970_v20 = vpop.f32.mrf.mxu2 }
 0x3ee   :  { %v2048_v50 = vpop.f32.mrf.mxu1  ;;  %2337 = vmatmul.msk.f32.gmra.mxu1 %vm87_vm0, %v1970_v20 }
 0x3ef   :  { %2340 = vmatmul.msk.f32.gmra.mxu2 %vm87_vm0, %v2048_v50 }
 0x3f2   :  { %2343 = vmatmul.msk.f32.gmra.mxu3 %vm87_vm0, %v2126_v39 }
 0x3f6   :  { %v2074_v57 = vpop.f32.mrf.mxu2  ;;  %2338 = vmatmul.msk.f32.gmra.mxu1 %vm87_vm0, %v1996_v34 }
 0x3f7   :  { %2341 = vmatmul.msk.f32.gmra.mxu2 %vm87_vm0, %v2074_v57 }
 0x456   :  { %v2187_v30 = vpop.f32.mrf.mxu2 }
 0x457   :  { %v2188_v46 = vadd.f32 %v2383_v58, %v2187_v30 }
 0x459   :  { %2205 = vst.msk [vmem:[#allocation8 + $0x18] sm:$0xff] %vm87_vm0, %v2188_v46 }
 0x45a   :  { %v2178_v18 = vpop.f32.mrf.mxu1 }
 0x45b   :  { %v2179_v2 = vadd.f32 %v2383_v58, %v2178_v18 }
 0x45d   :  { %2202 = vst.msk [vmem:[#allocation8] sm:$0xff] %vm87_vm0, %v2179_v2 }
 0x46b   :  { %v2181_v21 = vpop.f32.mrf.mxu1 }
 0x46c   :  { %v2182_v59 = vadd.f32 %v2383_v58, %v2181_v21 }
 0x46d   :  { %v2196_v11 = vpop.f32.mrf.mxu3 }
 0x46e   :  { %2203 = vst.msk [vmem:[#allocation8 + $0x8] sm:$0xff] %vm87_vm0, %v2182_v59  ;;  %v2197_v15 = vadd.f32 %v2383_v58, %v2196_v11 }
 0x470   :  { %2208 = vst.msk [vmem:[#allocation8 + $0x30] sm:$0xff] %vm87_vm0, %v2197_v15 }
 0x472   :  { %v2190_v32 = vpop.f32.mrf.mxu2 }
 0x473   :  { %v2191_v14 = vadd.f32 %v2383_v58, %v2190_v32  ;;  %v2184_v16 = vpop.f32.mrf.mxu1 }
 0x474   :  { %v2185_v52 = vadd.f32 %v2383_v58, %v2184_v16 }
 0x475   :  { %2206 = vst.msk [vmem:[#allocation8 + $0x20] sm:$0xff] %vm87_vm0, %v2191_v14  ;;  %v2199_v8 = vpop.f32.mrf.mxu3 }
 0x476   :  { %2204 = vst.msk [vmem:[#allocation8 + $0x10] sm:$0xff] %vm87_vm0, %v2185_v52  ;;  %v2200_v63 = vadd.f32 %v2383_v58, %v2199_v8 }
 0x478   :  { %2209 = vst.msk [vmem:[#allocation8 + $0x38] sm:$0xff] %vm87_vm0, %v2200_v63 }
 0x47a   :  { %v2193_v45 = vpop.f32.mrf.mxu2 }
 0x47b   :  { %v2194_v19 = vadd.f32 %v2383_v58, %v2193_v45 }
 0x47d   :  { %2207 = vst.msk [vmem:[#allocation8 + $0x28] sm:$0xff] %vm87_vm0, %v2194_v19 }
 0x47e   :  { %2230 = dma.vmem_to_hbm [thread:$0]  %s2223_s6, 1024, %s2225_s7, [#allocation4], %s2641_s29, %s2641_s29, %s2642_s30  }
 0x47f   :  { %2636 = dma.done.wait [#allocation4], 1024  }
 0x480   :  { %2637 = vsyncadd [#allocation4], 4294966272 }
 0x481   :  { %2638 = dma.done.wait [#allocation10], 1024  }
 0x482   :  { %2639 = vsyncadd [#allocation10], 4294966272 }
 0x483   :  { %2252 = vsyncpa [#allocation3], 1 }
 0x484   :  { %2253 = vsyncpa [#allocation6], 1 }
 0x485   :  { %2254 = vsyncpa [#allocation4], 1 }
 0x486   :  { %2255 = vsyncpa [#allocation10], 1 }

</bundles_post_ra>
